<compile_context>
chip_gen: v6e
topology: v6e:2x2x1
jax: 0.10.0
libtpu: 0.0.40
codegen_flags: <defaults>
</compile_context>

<pallas_src>
import jax
import jax.numpy as jnp
from jax import lax
from jax.experimental import pallas as pl
from jax.experimental.pallas import tpu as pltpu

EPS = 1e-9        # module's `eps`
KERPAR = 1        # module's `kerpar` (unused in forward, kept for fidelity)


def buildk_kernel(uu_ref, uuj_ref, idxt_ref, wt_ref):
    """One grid step computes W (transposed) for `tj` query pixels.

    uu_ref   : (C, N)   float32  full pixel-feature matrix (same block every step)
    uuj_ref  : (C, tj)  float32  feature columns of this tile's query pixels
    idxt_ref : (K, tj)  int32    neighbor indices (transposed) for this tile
    wt_ref   : (K, tj)  float32  softmax output (transposed) for this tile
    """
    n_feat, n_pix = uu_ref.shape
    k_nb, tj = idxt_ref.shape
    inv_c = 1.0 / float(n_feat)

    uu_all = uu_ref[...]                                   # (C, N)  lanes = pixels
    uu_j = uuj_ref[...]                                    # (C, tj) query columns
    idx_all = idxt_ref[...]                                # (K, tj) one vreg, loaded once

    # Sublane index == pixel id; compared against each neighbor-index row to build the
    # one-hot gather matrix for that neighbor.
    row_iota = lax.broadcasted_iota(jnp.int32, (n_pix, tj), 0)          # (N, tj)

    rows = []                                   # K register-resident (1, tj) D^T rows
    for i in range(k_nb):                       # K is small & static -> unrolled
        # One-hot gather matrix for neighbor i: onehot[n, t] = (idx[i, t] == n).
        onehot = (row_iota == idx_all[i:i + 1, :]).astype(jnp.float32)  # (N, tj)

        # MXU gather (contraction over pixels, MXU-native orientation):
        #   gathered[c, t] = UU[c, idx[i, t]]
        gathered = lax.dot_general(uu_all, onehot, (((1,), (0,)), ((), ())),
                                   preferred_element_type=jnp.float32)  # (C, tj)

        # Direct difference — no Gram expansion, no cancellation at distance 0.
        diff = uu_j - gathered                                          # (C, tj)
        msq = jnp.sum(diff * diff, axis=0, keepdims=True) * inv_c       # (1, tj)
        rows.append(-jnp.sqrt(msq + EPS))                               # (1, tj)

    # Assemble D^T as one lane-dense (K, tj) value (no VMEM scratch, no partial stores).
    dt = jnp.concatenate(rows, axis=0)                                  # (K, tj)

    # Softmax over the K neighbors == sublane softmax of the lane-dense (K, tj) tile.
    m = jnp.max(dt, axis=0, keepdims=True)
    e = jnp.exp(dt - m)
    denom = jnp.sum(e, axis=0, keepdims=True)
    # Exact reciprocal: approx=True (~2^-12 rel. err) would break the row-sum invariant;
    # one hoisted divide per tile is off the hot path.
    wt_ref[...] = e * pl.reciprocal(denom, approx=False)                # single vst


def build_k(input1, input2, *, tj=128, transpose_output=True):
    """Pallas implementation of BuildK.forward(input1, input2).

    Set transpose_output=False to get the kernel-native lane-dense (K, J) layout and
    skip the wrapper-side transpose (a separate XLA launch + HBM round-trip).
    """
    b0, C, H, W = input1.shape
    assert b0 == 1, "PyTorch .view(C, H*W) implies batch == 1"
    N = H * W

    # Lane-dense layout: keep UU as (C, N) (lanes = pixels); no HBM-level transpose.
    UU = input1.reshape(C, N).astype(jnp.float32)                      # (C, N)
    idx_t = jnp.transpose(input2.astype(jnp.int32))                    # (K, J), tiny
    K, J = idx_t.shape
    assert J <= N

    # Tile selection:
    #   v7x (2 TCs): keep grid length >= 2 (tj <= J/2) so both cores get work.
    #   v5e/v6e (1 TC): tj = J (single step) minimizes the ~0.35 us/step overhead.
    #   Scaling up: keep the (N, tj) one-hot working set well under the scoped VMEM
    #   budget (32 MiB default; 64 MiB physical on v7x); grow N-chunks, not tj.
    tj = min(tj, J)
    assert J % tj == 0, "row count must tile evenly for this demo"

    w_t = pl.pallas_call(
        buildk_kernel,
        out_shape=jax.ShapeDtypeStruct((K, J), jnp.float32),
        grid_spec=pltpu.PrefetchScalarGridSpec(
            num_scalar_prefetch=0,
            grid=(J // tj,),
            in_specs=[
                # Full UU, resident every step (constant index_map -> DMA'd once).
                pl.BlockSpec((C, N), lambda j: (0, 0)),
                # This tile's query-pixel feature columns (~2 KB; kept as a BlockSpec
                # stream rather than a dynamic lane-dim ref slice for robustness).
                pl.BlockSpec((C, tj), lambda j: (0, j)),
                # Neighbor indices, transposed so lanes index query pixels.
                pl.BlockSpec((K, tj), lambda j: (0, j)),
            ],
            out_specs=pl.BlockSpec((K, tj), lambda j: (0, j)),
        ),
        compiler_params=pltpu.CompilerParams(
            dimension_semantics=("parallel",),          # >=2 steps -> both v7x TCs busy
            vmem_limit_bytes=32 * 1024 * 1024,          # explicit budget (safe on v5e/v6e/v7x)
        ),
    )(UU, UU, idx_t)

    if transpose_output:
        return jnp.transpose(w_t)                                       # (J, K) as in PyTorch
    return w_t                                                          # (K, J) lane-dense


def build_k_reference(input1, input2):
    """Pure-JAX reference mirroring the PyTorch forward (direct differences, f32)."""
    _, C, H, W = input1.shape
    N = H * W
    UU = jnp.transpose(input1.reshape(C, N)).astype(jnp.float32)        # (N, C)
    idx = input2.astype(jnp.int32)
    J = idx.shape[0]
    gathered = UU[idx]                                                  # (J, K, C)
    diff = UU[:J][:, None, :] - gathered
    D = -jnp.sqrt(jnp.mean(diff * diff, axis=-1) + EPS)
    return jax.nn.softmax(D, axis=1)


if __name__ == "__main__":
    key = jax.random.PRNGKey(0)
    k1, k2 = jax.random.split(key)

    # input1: (1, C, H, W) = (1, 4, 16, 16)  -> UU is 256 pixels x 4 features
    # input2: (J, K) = (256, 8) neighbor indices in [0, H*W)
    input1 = jax.random.normal(k1, (1, 4, 16, 16), dtype=jnp.float32)
    input2 = jax.random.randint(k2, (256, 8), 0, 16 * 16, dtype=jnp.int32)

    w_out = build_k(input1, input2)
    jax.block_until_ready(w_out)

    w_ref = build_k_reference(input1, input2)
    assert w_out.shape == (256, 8)

    # Direct-difference formulation: no Gram cancellation -> one uniform tight bound,
    # including rows whose neighbor list contains the pixel itself.
    max_err = float(jnp.max(jnp.abs(w_out - w_ref)))
    assert max_err < 1e-4, f"mismatch vs reference: {max_err}"
    assert jnp.allclose(jnp.sum(w_out, axis=1), 1.0, atol=1e-5), "softmax rows must sum to 1"

    print("KERNEL_OK")
</pallas_src>

<mosaic_0001>
module attributes {stable_mosaic.version = 11 : i64} {
  func.func @buildk_kernel(%arg0: i32, %arg1: memref<4x256xf32, #tpu.memory_space<vmem>>, %arg2: memref<4x128xf32, #tpu.memory_space<vmem>>, %arg3: memref<8x128xi32, #tpu.memory_space<vmem>>, %arg4: memref<8x128xf32, #tpu.memory_space<vmem>>) attributes {dimension_semantics = [#tpu.dimension_semantics<parallel>], iteration_bounds = array<i64: 2>, scalar_prefetch = 0 : i64, scratch_operands = 0 : i64, tpu.core_type = #tpu.core_type<tc>, window_params = [{pipeline_mode = #tpu.pipeline_mode<synchronous>, transform_indices = @transform_0, window_bounds = array<i64: 4, 256>}, {transform_indices = @transform_1, window_bounds = array<i64: 4, 128>}, {transform_indices = @transform_2, window_bounds = array<i64: 8, 128>}, {transform_indices = @transform_3, window_bounds = array<i64: 8, 128>}]} {
    %c0 = arith.constant 0 : index
    %c0_0 = arith.constant 0 : index
    %0 = vector.load %arg1[%c0, %c0_0] : memref<4x256xf32, #tpu.memory_space<vmem>>, vector<4x256xf32>
    %c0_1 = arith.constant 0 : index
    %c0_2 = arith.constant 0 : index
    %1 = vector.load %arg2[%c0_1, %c0_2] : memref<4x128xf32, #tpu.memory_space<vmem>>, vector<4x128xf32>
    %c0_3 = arith.constant 0 : index
    %c0_4 = arith.constant 0 : index
    %2 = vector.load %arg3[%c0_3, %c0_4] : memref<8x128xi32, #tpu.memory_space<vmem>>, vector<8x128xi32>
    %3 = tpu.iota {dimensions = array<i32: 0>} : vector<256x128xi32>
    %4 = vector.extract_strided_slice %2 {offsets = [0, 0], sizes = [1, 128], strides = [1, 1]} : vector<8x128xi32> to vector<1x128xi32>
    %5 = vector.broadcast %4 : vector<1x128xi32> to vector<256x128xi32>
    %6 = arith.cmpi eq, %3, %5 : vector<256x128xi32>
    %7 = arith.extui %6 : vector<256x128xi1> to vector<256x128xi32>
    %8 = arith.sitofp %7 : vector<256x128xi32> to vector<256x128xf32>
    %cst = arith.constant dense<0.000000e+00> : vector<4x128xf32>
    %9 = tpu.matmul %0, %8, %cst {dimension_numbers = #tpu.dot_dimension_numbers<[1], [0], [0], [1], [0, 0, 1, 1], [], []>} : vector<4x256xf32>, vector<256x128xf32>, vector<4x128xf32> -> vector<4x128xf32>
    %10 = arith.subf %1, %9 : vector<4x128xf32>
    %11 = arith.mulf %10, %10 : vector<4x128xf32>
    %cst_5 = arith.constant dense<0.000000e+00> : vector<128xf32>
    %12 = vector.multi_reduction <add>, %11, %cst_5 [0] : vector<4x128xf32> to vector<128xf32>
    %13 = vector.shape_cast %12 : vector<128xf32> to vector<1x128xf32>
    %cst_6 = arith.constant 2.500000e-01 : f32
    %14 = vector.broadcast %cst_6 : f32 to vector<1x128xf32>
    %15 = arith.mulf %13, %14 : vector<1x128xf32>
    %cst_7 = arith.constant 9.99999971E-10 : f32
    %16 = vector.broadcast %cst_7 : f32 to vector<1x128xf32>
    %17 = arith.addf %15, %16 : vector<1x128xf32>
    %18 = math.sqrt %17 : vector<1x128xf32>
    %cst_8 = arith.constant 0.000000e+00 : f32
    %19 = vector.broadcast %cst_8 : f32 to vector<1x128xf32>
    %20 = arith.subf %19, %18 : vector<1x128xf32>
    %21 = vector.extract_strided_slice %2 {offsets = [1, 0], sizes = [1, 128], strides = [1, 1]} : vector<8x128xi32> to vector<1x128xi32>
    %22 = vector.broadcast %21 : vector<1x128xi32> to vector<256x128xi32>
    %23 = arith.cmpi eq, %3, %22 : vector<256x128xi32>
    %24 = arith.extui %23 : vector<256x128xi1> to vector<256x128xi32>
    %25 = arith.sitofp %24 : vector<256x128xi32> to vector<256x128xf32>
    %cst_9 = arith.constant dense<0.000000e+00> : vector<4x128xf32>
    %26 = tpu.matmul %0, %25, %cst_9 {dimension_numbers = #tpu.dot_dimension_numbers<[1], [0], [0], [1], [0, 0, 1, 1], [], []>} : vector<4x256xf32>, vector<256x128xf32>, vector<4x128xf32> -> vector<4x128xf32>
    %27 = arith.subf %1, %26 : vector<4x128xf32>
    %28 = arith.mulf %27, %27 : vector<4x128xf32>
    %cst_10 = arith.constant dense<0.000000e+00> : vector<128xf32>
    %29 = vector.multi_reduction <add>, %28, %cst_10 [0] : vector<4x128xf32> to vector<128xf32>
    %30 = vector.shape_cast %29 : vector<128xf32> to vector<1x128xf32>
    %cst_11 = arith.constant 2.500000e-01 : f32
    %31 = vector.broadcast %cst_11 : f32 to vector<1x128xf32>
    %32 = arith.mulf %30, %31 : vector<1x128xf32>
    %cst_12 = arith.constant 9.99999971E-10 : f32
    %33 = vector.broadcast %cst_12 : f32 to vector<1x128xf32>
    %34 = arith.addf %32, %33 : vector<1x128xf32>
    %35 = math.sqrt %34 : vector<1x128xf32>
    %cst_13 = arith.constant 0.000000e+00 : f32
    %36 = vector.broadcast %cst_13 : f32 to vector<1x128xf32>
    %37 = arith.subf %36, %35 : vector<1x128xf32>
    %38 = vector.extract_strided_slice %2 {offsets = [2, 0], sizes = [1, 128], strides = [1, 1]} : vector<8x128xi32> to vector<1x128xi32>
    %39 = vector.broadcast %38 : vector<1x128xi32> to vector<256x128xi32>
    %40 = arith.cmpi eq, %3, %39 : vector<256x128xi32>
    %41 = arith.extui %40 : vector<256x128xi1> to vector<256x128xi32>
    %42 = arith.sitofp %41 : vector<256x128xi32> to vector<256x128xf32>
    %cst_14 = arith.constant dense<0.000000e+00> : vector<4x128xf32>
    %43 = tpu.matmul %0, %42, %cst_14 {dimension_numbers = #tpu.dot_dimension_numbers<[1], [0], [0], [1], [0, 0, 1, 1], [], []>} : vector<4x256xf32>, vector<256x128xf32>, vector<4x128xf32> -> vector<4x128xf32>
    %44 = arith.subf %1, %43 : vector<4x128xf32>
    %45 = arith.mulf %44, %44 : vector<4x128xf32>
    %cst_15 = arith.constant dense<0.000000e+00> : vector<128xf32>
    %46 = vector.multi_reduction <add>, %45, %cst_15 [0] : vector<4x128xf32> to vector<128xf32>
    %47 = vector.shape_cast %46 : vector<128xf32> to vector<1x128xf32>
    %cst_16 = arith.constant 2.500000e-01 : f32
    %48 = vector.broadcast %cst_16 : f32 to vector<1x128xf32>
    %49 = arith.mulf %47, %48 : vector<1x128xf32>
    %cst_17 = arith.constant 9.99999971E-10 : f32
    %50 = vector.broadcast %cst_17 : f32 to vector<1x128xf32>
    %51 = arith.addf %49, %50 : vector<1x128xf32>
    %52 = math.sqrt %51 : vector<1x128xf32>
    %cst_18 = arith.constant 0.000000e+00 : f32
    %53 = vector.broadcast %cst_18 : f32 to vector<1x128xf32>
    %54 = arith.subf %53, %52 : vector<1x128xf32>
    %55 = vector.extract_strided_slice %2 {offsets = [3, 0], sizes = [1, 128], strides = [1, 1]} : vector<8x128xi32> to vector<1x128xi32>
    %56 = vector.broadcast %55 : vector<1x128xi32> to vector<256x128xi32>
    %57 = arith.cmpi eq, %3, %56 : vector<256x128xi32>
    %58 = arith.extui %57 : vector<256x128xi1> to vector<256x128xi32>
    %59 = arith.sitofp %58 : vector<256x128xi32> to vector<256x128xf32>
    %cst_19 = arith.constant dense<0.000000e+00> : vector<4x128xf32>
    %60 = tpu.matmul %0, %59, %cst_19 {dimension_numbers = #tpu.dot_dimension_numbers<[1], [0], [0], [1], [0, 0, 1, 1], [], []>} : vector<4x256xf32>, vector<256x128xf32>, vector<4x128xf32> -> vector<4x128xf32>
    %61 = arith.subf %1, %60 : vector<4x128xf32>
    %62 = arith.mulf %61, %61 : vector<4x128xf32>
    %cst_20 = arith.constant dense<0.000000e+00> : vector<128xf32>
    %63 = vector.multi_reduction <add>, %62, %cst_20 [0] : vector<4x128xf32> to vector<128xf32>
    %64 = vector.shape_cast %63 : vector<128xf32> to vector<1x128xf32>
    %cst_21 = arith.constant 2.500000e-01 : f32
    %65 = vector.broadcast %cst_21 : f32 to vector<1x128xf32>
    %66 = arith.mulf %64, %65 : vector<1x128xf32>
    %cst_22 = arith.constant 9.99999971E-10 : f32
    %67 = vector.broadcast %cst_22 : f32 to vector<1x128xf32>
    %68 = arith.addf %66, %67 : vector<1x128xf32>
    %69 = math.sqrt %68 : vector<1x128xf32>
    %cst_23 = arith.constant 0.000000e+00 : f32
    %70 = vector.broadcast %cst_23 : f32 to vector<1x128xf32>
    %71 = arith.subf %70, %69 : vector<1x128xf32>
    %72 = vector.extract_strided_slice %2 {offsets = [4, 0], sizes = [1, 128], strides = [1, 1]} : vector<8x128xi32> to vector<1x128xi32>
    %73 = vector.broadcast %72 : vector<1x128xi32> to vector<256x128xi32>
    %74 = arith.cmpi eq, %3, %73 : vector<256x128xi32>
    %75 = arith.extui %74 : vector<256x128xi1> to vector<256x128xi32>
    %76 = arith.sitofp %75 : vector<256x128xi32> to vector<256x128xf32>
    %cst_24 = arith.constant dense<0.000000e+00> : vector<4x128xf32>
    %77 = tpu.matmul %0, %76, %cst_24 {dimension_numbers = #tpu.dot_dimension_numbers<[1], [0], [0], [1], [0, 0, 1, 1], [], []>} : vector<4x256xf32>, vector<256x128xf32>, vector<4x128xf32> -> vector<4x128xf32>
    %78 = arith.subf %1, %77 : vector<4x128xf32>
    %79 = arith.mulf %78, %78 : vector<4x128xf32>
    %cst_25 = arith.constant dense<0.000000e+00> : vector<128xf32>
    %80 = vector.multi_reduction <add>, %79, %cst_25 [0] : vector<4x128xf32> to vector<128xf32>
    %81 = vector.shape_cast %80 : vector<128xf32> to vector<1x128xf32>
    %cst_26 = arith.constant 2.500000e-01 : f32
    %82 = vector.broadcast %cst_26 : f32 to vector<1x128xf32>
    %83 = arith.mulf %81, %82 : vector<1x128xf32>
    %cst_27 = arith.constant 9.99999971E-10 : f32
    %84 = vector.broadcast %cst_27 : f32 to vector<1x128xf32>
    %85 = arith.addf %83, %84 : vector<1x128xf32>
    %86 = math.sqrt %85 : vector<1x128xf32>
    %cst_28 = arith.constant 0.000000e+00 : f32
    %87 = vector.broadcast %cst_28 : f32 to vector<1x128xf32>
    %88 = arith.subf %87, %86 : vector<1x128xf32>
    %89 = vector.extract_strided_slice %2 {offsets = [5, 0], sizes = [1, 128], strides = [1, 1]} : vector<8x128xi32> to vector<1x128xi32>
    %90 = vector.broadcast %89 : vector<1x128xi32> to vector<256x128xi32>
    %91 = arith.cmpi eq, %3, %90 : vector<256x128xi32>
    %92 = arith.extui %91 : vector<256x128xi1> to vector<256x128xi32>
    %93 = arith.sitofp %92 : vector<256x128xi32> to vector<256x128xf32>
    %cst_29 = arith.constant dense<0.000000e+00> : vector<4x128xf32>
    %94 = tpu.matmul %0, %93, %cst_29 {dimension_numbers = #tpu.dot_dimension_numbers<[1], [0], [0], [1], [0, 0, 1, 1], [], []>} : vector<4x256xf32>, vector<256x128xf32>, vector<4x128xf32> -> vector<4x128xf32>
    %95 = arith.subf %1, %94 : vector<4x128xf32>
    %96 = arith.mulf %95, %95 : vector<4x128xf32>
    %cst_30 = arith.constant dense<0.000000e+00> : vector<128xf32>
    %97 = vector.multi_reduction <add>, %96, %cst_30 [0] : vector<4x128xf32> to vector<128xf32>
    %98 = vector.shape_cast %97 : vector<128xf32> to vector<1x128xf32>
    %cst_31 = arith.constant 2.500000e-01 : f32
    %99 = vector.broadcast %cst_31 : f32 to vector<1x128xf32>
    %100 = arith.mulf %98, %99 : vector<1x128xf32>
    %cst_32 = arith.constant 9.99999971E-10 : f32
    %101 = vector.broadcast %cst_32 : f32 to vector<1x128xf32>
    %102 = arith.addf %100, %101 : vector<1x128xf32>
    %103 = math.sqrt %102 : vector<1x128xf32>
    %cst_33 = arith.constant 0.000000e+00 : f32
    %104 = vector.broadcast %cst_33 : f32 to vector<1x128xf32>
    %105 = arith.subf %104, %103 : vector<1x128xf32>
    %106 = vector.extract_strided_slice %2 {offsets = [6, 0], sizes = [1, 128], strides = [1, 1]} : vector<8x128xi32> to vector<1x128xi32>
    %107 = vector.broadcast %106 : vector<1x128xi32> to vector<256x128xi32>
    %108 = arith.cmpi eq, %3, %107 : vector<256x128xi32>
    %109 = arith.extui %108 : vector<256x128xi1> to vector<256x128xi32>
    %110 = arith.sitofp %109 : vector<256x128xi32> to vector<256x128xf32>
    %cst_34 = arith.constant dense<0.000000e+00> : vector<4x128xf32>
    %111 = tpu.matmul %0, %110, %cst_34 {dimension_numbers = #tpu.dot_dimension_numbers<[1], [0], [0], [1], [0, 0, 1, 1], [], []>} : vector<4x256xf32>, vector<256x128xf32>, vector<4x128xf32> -> vector<4x128xf32>
    %112 = arith.subf %1, %111 : vector<4x128xf32>
    %113 = arith.mulf %112, %112 : vector<4x128xf32>
    %cst_35 = arith.constant dense<0.000000e+00> : vector<128xf32>
    %114 = vector.multi_reduction <add>, %113, %cst_35 [0] : vector<4x128xf32> to vector<128xf32>
    %115 = vector.shape_cast %114 : vector<128xf32> to vector<1x128xf32>
    %cst_36 = arith.constant 2.500000e-01 : f32
    %116 = vector.broadcast %cst_36 : f32 to vector<1x128xf32>
    %117 = arith.mulf %115, %116 : vector<1x128xf32>
    %cst_37 = arith.constant 9.99999971E-10 : f32
    %118 = vector.broadcast %cst_37 : f32 to vector<1x128xf32>
    %119 = arith.addf %117, %118 : vector<1x128xf32>
    %120 = math.sqrt %119 : vector<1x128xf32>
    %cst_38 = arith.constant 0.000000e+00 : f32
    %121 = vector.broadcast %cst_38 : f32 to vector<1x128xf32>
    %122 = arith.subf %121, %120 : vector<1x128xf32>
    %123 = vector.extract_strided_slice %2 {offsets = [7, 0], sizes = [1, 128], strides = [1, 1]} : vector<8x128xi32> to vector<1x128xi32>
    %124 = vector.broadcast %123 : vector<1x128xi32> to vector<256x128xi32>
    %125 = arith.cmpi eq, %3, %124 : vector<256x128xi32>
    %126 = arith.extui %125 : vector<256x128xi1> to vector<256x128xi32>
    %127 = arith.sitofp %126 : vector<256x128xi32> to vector<256x128xf32>
    %cst_39 = arith.constant dense<0.000000e+00> : vector<4x128xf32>
    %128 = tpu.matmul %0, %127, %cst_39 {dimension_numbers = #tpu.dot_dimension_numbers<[1], [0], [0], [1], [0, 0, 1, 1], [], []>} : vector<4x256xf32>, vector<256x128xf32>, vector<4x128xf32> -> vector<4x128xf32>
    %129 = arith.subf %1, %128 : vector<4x128xf32>
    %130 = arith.mulf %129, %129 : vector<4x128xf32>
    %cst_40 = arith.constant dense<0.000000e+00> : vector<128xf32>
    %131 = vector.multi_reduction <add>, %130, %cst_40 [0] : vector<4x128xf32> to vector<128xf32>
    %132 = vector.shape_cast %131 : vector<128xf32> to vector<1x128xf32>
    %cst_41 = arith.constant 2.500000e-01 : f32
    %133 = vector.broadcast %cst_41 : f32 to vector<1x128xf32>
    %134 = arith.mulf %132, %133 : vector<1x128xf32>
    %cst_42 = arith.constant 9.99999971E-10 : f32
    %135 = vector.broadcast %cst_42 : f32 to vector<1x128xf32>
    %136 = arith.addf %134, %135 : vector<1x128xf32>
    %137 = math.sqrt %136 : vector<1x128xf32>
    %cst_43 = arith.constant 0.000000e+00 : f32
    %138 = vector.broadcast %cst_43 : f32 to vector<1x128xf32>
    %139 = arith.subf %138, %137 : vector<1x128xf32>
    %140 = tpu.concatenate %20, %37, %54, %71, %88, %105, %122, %139 in 0 : vector<1x128xf32>, vector<1x128xf32>, vector<1x128xf32>, vector<1x128xf32>, vector<1x128xf32>, vector<1x128xf32>, vector<1x128xf32>, vector<1x128xf32> -> vector<8x128xf32>
    %cst_44 = arith.constant dense<0xFF800000> : vector<128xf32>
    %141 = vector.multi_reduction <maximumf>, %140, %cst_44 [0] : vector<8x128xf32> to vector<128xf32>
    %142 = vector.shape_cast %141 : vector<128xf32> to vector<1x128xf32>
    %143 = vector.broadcast %142 : vector<1x128xf32> to vector<8x128xf32>
    %144 = arith.subf %140, %143 : vector<8x128xf32>
    %145 = math.exp %144 : vector<8x128xf32>
    %cst_45 = arith.constant dense<0.000000e+00> : vector<128xf32>
    %146 = vector.multi_reduction <add>, %145, %cst_45 [0] : vector<8x128xf32> to vector<128xf32>
    %147 = vector.shape_cast %146 : vector<128xf32> to vector<1x128xf32>
    %148 = tpu.reciprocal %147 : vector<1x128xf32> -> vector<1x128xf32>
    %149 = vector.broadcast %148 : vector<1x128xf32> to vector<8x128xf32>
    %150 = arith.mulf %145, %149 : vector<8x128xf32>
    %c0_46 = arith.constant 0 : index
    %c0_47 = arith.constant 0 : index
    %151 = vector.load %arg4[%c0_46, %c0_47] : memref<8x128xf32, #tpu.memory_space<vmem>>, vector<8x128xf32>
    tpu.vector_store %arg4[%c0_46, %c0_47], %150 {strides = array<i32>} : memref<8x128xf32, #tpu.memory_space<vmem>>, vector<8x128xf32>,
    return
  }
  func.func @transform_0(%arg0: i32) -> (i32, i32) {
    %c0_i32 = arith.constant 0 : i32
    %c0_i32_0 = arith.constant 0 : i32
    %c0_i32_1 = arith.constant 0 : i32
    return %c0_i32, %c0_i32_0 : i32, i32
  }
  func.func @transform_1(%arg0: i32) -> (i32, i32) {
    %c0_i32 = arith.constant 0 : i32
    %c0_i32_0 = arith.constant 0 : i32
    return %c0_i32, %arg0 : i32, i32
  }
  func.func @transform_2(%arg0: i32) -> (i32, i32) {
    %c0_i32 = arith.constant 0 : i32
    %c0_i32_0 = arith.constant 0 : i32
    return %c0_i32, %arg0 : i32, i32
  }
  func.func @transform_3(%arg0: i32) -> (i32, i32) {
    %c0_i32 = arith.constant 0 : i32
    %c0_i32_0 = arith.constant 0 : i32
    return %c0_i32, %arg0 : i32, i32
  }
}

</mosaic_0001>

<bundles_post_ra>
// kernel: tpu_custom_call.1
= control target key start
LH: loop header
LB: loop body
LE: loop exit
PB: predicated region body
PF: predicated region fallthrough
CT: control target
= control target key end

     0   :  { %8 = vsyncpa [#allocation3], 0  ;;  %s4261_s0 = inlined_call_operand.hbm [shape: f32[4,256], index: 0, kind: input, shape index: {}]   ;;  %s4262_s1 = inlined_call_operand.hbm [shape: f32[4,256], index: 1, kind: input, shape index: {}]   ;;  %s4263_s2 = inlined_call_operand.hbm [shape: s32[8,256], index: 2, kind: input, shape index: {}]   ;;  %s4264_s3 = inlined_call_operand.hbm [shape: f32[8,256], index: 3, kind: output, shape index: {}]  }
   0x1   :  { %9 = vsyncpa [#allocation6], 0 }
   0x2   :  { %11 = vsyncpa [#allocation6 + $0x1], 0 }
   0x3   :  { %12 = vsyncpa [#allocation4], 0 }
   0x4   :  { %14 = vsyncpa [#allocation4 + $0x1], 0  ;;  %s3002_s12 = smov 0   ;;  %s3004_s13 = smov 0  }
   0x5   :  { %s3006_s14 = smov 0   ;;  %s3008_s15 = smov 0  }
   0x6 LB: > { %s3023_s16 = sadd.s32 1, %s2975_s15   ;;  %s48_s17 = sadd.s32 1, %s2971_s14  ;;  %s2975_s15 = sphi %s3008_s15, %s4295_s15   ;;  %s2971_s14 = sphi %s3006_s14, %s4294_s14   ;;  %s2967_s13 = sphi %s3004_s13, %s4293_s13   ;;  %s2963_s12 = sphi %s3002_s12, %s4292_s12  }
   0x7   : > { %s45_s18 = ssub.s32 %s2975_s15, %s3023_s16  ;;  %p4265_p0 = scmp.ne.s32.totalorder %s2971_s14, %s2967_s13 }
   0x8   : > { %p46_p1 = scmp.eq.s32.totalorder %s45_s18, 0  ;;  %p56_p2 = scmp.eq.s32.totalorder %s2975_s15, 0 }
   0x9   : > { %p2767_p4 = scmp.lt.s32.totalorder %s2975_s15, 2  ;;  %s148_s20 = sand.u32 1, %s2975_s15  }
   0xa   : > { %s3034_s19 = scalar_select %p46_p1, %s2971_s14, %s48_s17  }
   0xb   : > { %p57_p5 = por %p56_p2, %p4265_p0  ;;  %s150_s21 = sand.u32 1, %s2971_s14  }
   0xc   : > { %s1936_s22 = sshll.u32 %s150_s21, 2  ;;  %s1937_s23 = sshll.u32 %s2975_s15, 6 }
   0xd   : > { %s3045_s26 = scalar_lea.hbm %s4262_s1, %s1937_s23  ;;  %s152_s27 = scalar_lea.vmem [#allocation5], %s1936_s22 }
   0xe   : > { %s159_s28 = sshll.u32 %s152_s27, 4  ;;  %p3047_p6 = pnand %p2767_p4, %p57_p5  ;;  %s160_s28 = int_to_ptr.vmem [resolvable:$true] %s159_s28 }
   0xf   : > { %s3051_s30 = sshll.u32 %s150_s21, 3  ;;  %s3053_s4 = scalar_lea.sflag [#allocation6], %s148_s20 }
  0x10   : > { %s2825_s5 = scalar_lea.hbm %s3045_s26, 64  ;;  %p2827_p8 = pneg %p3047_p6 }
  0x11   : > { %p2826_p7 = scmp.ne.s32.totalorder %s3045_s26, %s2825_s5  ;;  %s2830_s8 = scalar_lea.hbm %s4262_s1, 128 }
  0x12   : > { %p2831_p11 = scmp.lt.s32.totalorder %s3045_s26, %s4262_s1  ;;  %p2832_p12 = scmp.lt.s32.totalorder %s2830_s8, %s2825_s5 }
  0x13   : > { %p2828_p9 = pnand %p2827_p8, %p2826_p7 }
  0x14   : > { %p2833_p13 = por %p2832_p12, %p2831_p11 }
  0x15   : > { %p2829_p10 = pneg %p2828_p9 }
  0x17   : > { %p2834_p1 = pnand %p2833_p13, %p2829_p10 }
  0x19   : > { %2837 = shalt.err (!%p2834_p1)
}
  0x1a   : > { %s2838_s11 = scalar_lea.vmem %s160_s28, 64  ;;  %s2977_s17 = smov [#allocation5]  }
  0x1b   : > { %p2839_p2 = scmp.ne.s32.totalorder %s160_s28, %s2838_s11  ;;  %s2843_s18 = sshll.u32 %s2977_s17, 4  ;;  %s2844_s18 = int_to_ptr.vmem [resolvable:$false] %s2843_s18 }
  0x1c   : > { %s2845_s20 = scalar_lea.vmem %s2844_s18, 128  ;;  %p2846_p7 = scmp.lt.s32.totalorder %s160_s28, %s2844_s18 }
  0x1d   : > { %p2841_p4 = pnand %p2839_p2, %p2827_p8  ;;  %p2847_p9 = scmp.lt.s32.totalorder %s2845_s20, %s2838_s11 }
  0x1f   : > { %p2842_p5 = pneg %p2841_p4  ;;  %p2848_p3 = por %p2847_p9, %p2846_p7 }
  0x21   : > { %p2849_p0 = pnand %p2848_p3, %p2842_p5 }
  0x23   : > { %2852 = shalt.err (!%p2849_p0)
}
  0x24   : > { %2758 = dma.hbm_to_vmem [thread:$0]  (!%p3047_p6), %s3045_s26, 64, %s160_s28, %s3053_s4  }
  0x25   : > { %s3077_s21 = sadd.s32 4294967295, %s2975_s15   ;;  %s1932_s22 = sadd.s32 4294967294, %s2975_s15  }
  0x26   : > { %p61_p0 = scmp.ne.s32.totalorder %s2967_s13, %s2963_s12  ;;  %p4266_p3 = scmp.eq.s32.totalorder %s3077_s21, 0 }
  0x27   : > { %p111_p10 = scmp.eq.s32.totalorder %s3077_s21, 1  ;;  %p117_p11 = scmp.eq.s32.totalorder %s1932_s22, 1 }
  0x28   : > { %p1933_p12 = scmp.ge.s32.totalorder %s2975_s15, 1  ;;  %p3087_p13 = por %p4266_p3, %p61_p0 }
  0x29   : > { %p4273_p1 = scmp.ne.s32.totalorder %s2971_s14, %s2967_s13  ;;  %p3098_p4 = por %p117_p11, %p61_p0 }
  0x2a   : > { %s4272_s23 = scalar_select %p3087_p13, 1, 0 }
  0x2b   : > { %p3094_p2 = por %p111_p10, %p4273_p1  ;;  %p124_p5 = scmp.lt.s32.totalorder %s2975_s15, 3 }
  0x2c   : > { %s4275_s25 = scalar_select %p3098_p4, 1, 0 }
  0x2d   : > { %s4274_s24 = scalar_select %p3094_p2, 1, 0 }
  0x2e   : > { %p3103_p7 = pnand %p1933_p12, %p124_p5  ;;  %s2978_s27 = smov [#allocation2]  }
  0x2f   : > { %s137_s28 = sshll.u32 %s2978_s27, 4  ;;  %s1939_s5 = sshll.u32 %s2975_s15, 7  ;;  %s3107_s28 = int_to_ptr.vmem [resolvable:$true] %s137_s28 }
  0x30   : > { %s4276_s26 = scalar_select %p3103_p7, 1, 0 }
  0x31   : > { %p2751_p9 = pneg %p3103_p7  ;;  %s3115_s8 = scalar_lea.hbm %s4263_s2, %s1939_s5 }
  0x32   : > { %s170_s9 = scalar_lea.vmem [#allocation7], %s3051_s30  ;;  %s2853_s17 = scalar_lea.hbm %s3115_s8, 128 }
  0x33   : > { %s177_s10 = sshll.u32 %s170_s9, 4  ;;  %p3120_p0 = pnand %p2751_p9, %p4266_p3  ;;  %s178_s10 = int_to_ptr.vmem [resolvable:$true] %s177_s10 }
  0x34   : > { %p2854_p10 = scmp.ne.s32.totalorder %s3115_s8, %s2853_s17  ;;  %s2858_s22 = scalar_lea.hbm %s4263_s2, 256 }
  0x35   : > { %s4277_s11 = scalar_select %p3120_p0, 1, 0 }
  0x36   : > { %p2856_p11 = pnand %p2854_p10, %p2827_p8  ;;  %p2859_p1 = scmp.lt.s32.totalorder %s3115_s8, %s4263_s2 }
  0x37   : > { %p2860_p5 = scmp.lt.s32.totalorder %s2858_s22, %s2853_s17 }
  0x38   : > { %p2857_p12 = pneg %p2856_p11 }
  0x39   : > { %p2861_p9 = por %p2860_p5, %p2859_p1 }
  0x3b   : > { %p2862_p3 = pnand %p2861_p9, %p2857_p12 }
  0x3d   : > { %2865 = shalt.err (!%p2862_p3)
}
  0x3e   : > { %s2866_s30 = scalar_lea.vmem %s178_s10, 128  ;;  %s2979_s6 = smov [#allocation7]  }
  0x3f   : > { %p2867_p4 = scmp.ne.s32.totalorder %s178_s10, %s2866_s30  ;;  %s2871_s7 = sshll.u32 %s2979_s6, 4  ;;  %s2872_s7 = int_to_ptr.vmem [resolvable:$false] %s2871_s7 }
  0x40   : > { %s2873_s9 = scalar_lea.vmem %s2872_s7, 256  ;;  %p2874_p11 = scmp.lt.s32.totalorder %s178_s10, %s2872_s7 }
  0x41   : > { %p2869_p2 = pnand %p2867_p4, %p2827_p8  ;;  %p2875_p13 = scmp.lt.s32.totalorder %s2873_s9, %s2866_s30 }
  0x43   : > { %p2870_p10 = pneg %p2869_p2  ;;  %p2876_p7 = por %p2875_p13, %p2874_p11 }
  0x45   : > { %p2877_p0 = pnand %p2876_p7, %p2870_p10 }
  0x47   : > { %2880 = shalt.err (!%p2877_p0)
}
  0x48   : > { %2761 = dma.hbm_to_vmem [thread:$0]  (!%p3047_p6), %s3115_s8, 128, %s178_s10, %s3053_s4  }
  0x49   : > { %p4278_p8 = scmp.ne.s32.totalorder %s4277_s11, 0  ;;  %s2892_s17 = scalar_lea.vmem %s3107_s28, 128 }
  0x4a   : > { %p2893_p2 = scmp.ne.s32.totalorder %s3107_s28, %s2892_s17  ;;  %p2900_p1 = scmp.lt.s32.totalorder %s3107_s28, %s3107_s28 }
  0x4b   : > { %p2883_p3 = pneg %p4278_p8  ;;  %p2901_p13 = scmp.lt.s32.totalorder %s2892_s17, %s2892_s17 }
  0x4d   : > { %p2895_p4 = pnand %p2893_p2, %p2883_p3  ;;  %p2902_p7 = por %p2901_p13, %p2900_p1 }
  0x4f   : > { %p2896_p12 = pneg %p2895_p4 }
  0x51   : > { %p2903_p0 = pnand %p2902_p7, %p2896_p12 }
  0x53   : > { %2906 = shalt.err (!%p2903_p0)
}
  0x54   : > { %2754 = dma.hbm_to_vmem [thread:$0]  (!%p4278_p8), %s4261_s0, 128, %s3107_s28, [#allocation3]  }
  0x55   : > { %p4279_p6 = scmp.ne.s32.totalorder %s4276_s26, 0 }
  0x56   : > { %p4280_p5 = scmp.eq.s32.totalorder (!%p4279_p6), %s3077_s21, 0 }
  0x57   : > { %186 = sbr.rel (%p4279_p6) target bundleno = 552 (0x228), region = 32 }
  0x5c   : > { %2950 = dma.done.wait (%p4280_p5), [#allocation3], 128   ;;  %p4281_p9 = pmov %p4280_p5 }
  0x5d   : > { %s192_s4 = sand.u32 1, %s3077_s21   ;;  %s3163_s8 = sand.u32 1, %s2967_s13  }
  0x5e   : > { %2952 = vsyncadd (%p4281_p9), [#allocation3], 4294967168  ;;  %s1942_s10 = sshll.u32 %s3163_s8, 2  ;;  %s193_s11 = scalar_lea.sflag [#allocation6], %s192_s4 }
  0x5f   : > { %s3166_s20 = scalar_lea.vmem [#allocation5], %s1942_s10  ;;  %p4282_p10 = scmp.ne.s32.totalorder %s4272_s23, 0 }
  0x61   : > { %2954 = dma.done.wait (%p4282_p10), %s193_s11, 192  }
  0x62   : > { %2956 = vsyncadd (%p4282_p10), %s193_s11, 4294967104  ;;  %v236_v0 = vlaneseq  ;;  %s1943_s26 = sshll.u32 %s3163_s8, 3  ;;  %v2980_v14 = vmov 1.0   ;;  %v3438_v41 = vld [vmem:[#allocation2] sm:$0xff]  ;;  %v4140_v61 = vld [vmem:[%s3166_s20] sm:$0xf] }
  0x63   : > { %s205_s28 = scalar_lea.vmem [#allocation7], %s1943_s26  ;;  %v3472_v44 = vcombine.high %v3438_v41, %v3438_v41  ;;  %s2458_s23 = sshll.u32 %s3077_s21, 7 }
  0x64   : > { %v3173_v1 = vshrl.u32 %v236_v0, 7  ;;  %v3185_v6 = vld [vmem:[%s205_s28] sm:$0xff]  ;;  %s232_s22 = scalar_lea.vmem [#allocation8], %s1943_s26  ;;  %s1828_s6 = scalar_lea.hbm %s4264_s3, %s2458_s23 }
  0x65   : > { %436 = vmatprep.mubr.f32.mxu0 %v3472_v44  ;;  %626 = vmatprep.mubr.f32.mxu1 %v3472_v44  ;;  %s1830_s27 = sshll.u32 %s232_s22, 4  ;;  %s1817_s7 = scalar_lea.sflag [#allocation4], %s3163_s8  ;;  %s1831_s27 = int_to_ptr.vmem [resolvable:$true] %s1830_s27 }
  0x66   : > { %v271_v2 = vsub.s32 0, %v3173_v1  ;;  %v464_v3 = vsub.s32 1, %v3173_v1  ;;  %v3178_v4 = vadd.s32 248, %v3173_v1  ;;  %v3181_v5 = vadd.s32 120, %v3173_v1  ;;  %s2907_s9 = scalar_lea.vmem %s1831_s27, 128  ;;  %p4289_p8 = scmp.ne.s32.totalorder %s4274_s24, 0 }
  0x67   : > { %v3188_v7 = vadd.s32 240, %v3173_v1  ;;  %v3191_v8 = vadd.s32 112, %v3173_v1  ;;  %v3200_v11 = vadd.s32 232, %v3173_v1  ;;  %v3203_v12 = vadd.s32 104, %v3173_v1  ;;  %p2908_p11 = scmp.ne.s32.totalorder %s1831_s27, %s2907_s9  ;;  %s2981_s17 = smov [#allocation8]  }
  0x68   : > { %v3194_v9 = vrot.slane %v3185_v6, %v271_v2  ;;  %v3197_v10 = vrot.slane %v3185_v6, %v464_v3  ;;  %v3206_v13 = vadd.s32 224, %v3173_v1  ;;  %v3225_v15 = vadd.s32 96, %v3173_v1  ;;  %s2911_s29 = sshll.u32 %s2981_s17, 4  ;;  %s2912_s29 = int_to_ptr.vmem [resolvable:$false] %s2911_s29 }
  0x69   : > { %v3236_v16 = vadd.s32 216, %v3173_v1  ;;  %v3245_v17 = vadd.s32 88, %v3173_v1  ;;  %v3254_v18 = vadd.s32 208, %v3173_v1  ;;  %v3263_v19 = vadd.s32 80, %v3173_v1  ;;  %p2909_p3 = pnand %p2908_p11, %p4289_p8  ;;  %s2913_s21 = scalar_lea.vmem %s2912_s29, 256 }
  0x6a   : > { %vm304_vm0 = vcmp.eq.s32.totalorder %v3178_v4, %v3194_v9  ;;  %vm497_vm1 = vcmp.eq.s32.totalorder %v3178_v4, %v3197_v10  ;;  %vm288_vm2 = vcmp.eq.s32.totalorder %v3181_v5, %v3194_v9  ;;  %vm481_vm3 = vcmp.eq.s32.totalorder %v3181_v5, %v3197_v10  ;;  %p2914_p4 = scmp.lt.s32.totalorder %s1831_s27, %s2912_s29  ;;  %p2915_p12 = scmp.lt.s32.totalorder %s2913_s21, %s2907_s9 }
  0x6b   : > { %2461 = vmatprep.subr.msk.mxu0 %vm304_vm0, %v2980_v14  ;;  %2496 = vmatprep.subr.msk.mxu1 %vm497_vm1, %v2980_v14  ;;  %vm303_vm4 = vcmp.eq.s32.totalorder %v3188_v7, %v3194_v9  ;;  %vm496_vm5 = vcmp.eq.s32.totalorder %v3188_v7, %v3197_v10  ;;  %vm287_vm6 = vcmp.eq.s32.totalorder %v3191_v8, %v3194_v9  ;;  %v3272_v20 = vadd.s32 200, %v3173_v1  ;;  %p2910_p2 = pneg %p2909_p3 }
  0x6c   : > { %2462 = vmatpush3.msk.msra.mxu0 %vm288_vm2, %v2980_v14  ;;  %2497 = vmatpush3.msk.msra.mxu1 %vm481_vm3, %v2980_v14  ;;  %vm480_vm7 = vcmp.eq.s32.totalorder %v3191_v8, %v3197_v10  ;;  %vm302_vm8 = vcmp.eq.s32.totalorder %v3200_v11, %v3194_v9  ;;  %vm495_vm9 = vcmp.eq.s32.totalorder %v3200_v11, %v3197_v10  ;;  %v3281_v21 = vadd.s32 72, %v3173_v1  ;;  %p2916_p1 = por %p2915_p12, %p2914_p4 }
  0x6d   : > { %2463 = vmatprep.subr.msk.mxu0 %vm303_vm4, %v2980_v14  ;;  %2498 = vmatprep.subr.msk.mxu1 %vm496_vm5, %v2980_v14  ;;  %vm286_vm10 = vcmp.eq.s32.totalorder %v3203_v12, %v3194_v9  ;;  %vm479_vm11 = vcmp.eq.s32.totalorder %v3203_v12, %v3197_v10  ;;  %vm301_vm12 = vcmp.eq.s32.totalorder %v3206_v13, %v3194_v9  ;;  %v3290_v22 = vadd.s32 192, %v3173_v1 }
  0x6e   : > { %2464 = vmatpush3.msk.msra.mxu0 %vm287_vm6, %v2980_v14  ;;  %2499 = vmatpush3.msk.msra.mxu1 %vm480_vm7, %v2980_v14  ;;  %vm494_vm13 = vcmp.eq.s32.totalorder %v3206_v13, %v3197_v10  ;;  %vm285_vm14 = vcmp.eq.s32.totalorder %v3225_v15, %v3194_v9  ;;  %vm478_vm15 = vcmp.eq.s32.totalorder %v3225_v15, %v3197_v10  ;;  %v3299_v23 = vadd.s32 64, %v3173_v1  ;;  %p2917_p13 = pnand %p2916_p1, %p2910_p2 }
  0x6f   : > { %2465 = vmatprep.subr.msk.mxu0 %vm302_vm8, %v2980_v14  ;;  %2500 = vmatprep.subr.msk.mxu1 %vm495_vm9, %v2980_v14  ;;  %vm300_vm0 = vcmp.eq.s32.totalorder %v3236_v16, %v3194_v9  ;;  %vm493_vm1 = vcmp.eq.s32.totalorder %v3236_v16, %v3197_v10  ;;  %vm284_vm2 = vcmp.eq.s32.totalorder %v3245_v17, %v3194_v9  ;;  %v3308_v24 = vadd.s32 184, %v3173_v1 }
  0x70   : > { %2466 = vmatpush3.msk.msra.mxu0 %vm286_vm10, %v2980_v14  ;;  %2501 = vmatpush3.msk.msra.mxu1 %vm479_vm11, %v2980_v14  ;;  %vm477_vm3 = vcmp.eq.s32.totalorder %v3245_v17, %v3197_v10  ;;  %vm299_vm4 = vcmp.eq.s32.totalorder %v3254_v18, %v3194_v9  ;;  %vm492_vm5 = vcmp.eq.s32.totalorder %v3254_v18, %v3197_v10  ;;  %v3317_v25 = vadd.s32 56, %v3173_v1 }
  0x71   : > { %2467 = vmatprep.subr.msk.mxu0 %vm301_vm12, %v2980_v14  ;;  %2502 = vmatprep.subr.msk.mxu1 %vm494_vm13, %v2980_v14  ;;  %vm283_vm6 = vcmp.eq.s32.totalorder %v3263_v19, %v3194_v9  ;;  %vm476_vm7 = vcmp.eq.s32.totalorder %v3263_v19, %v3197_v10  ;;  %vm298_vm8 = vcmp.eq.s32.totalorder %v3272_v20, %v3194_v9  ;;  %v3326_v26 = vadd.s32 176, %v3173_v1 }
  0x72   : > { %2468 = vmatpush3.msk.msra.mxu0 %vm285_vm14, %v2980_v14  ;;  %2503 = vmatpush3.msk.msra.mxu1 %vm478_vm15, %v2980_v14  ;;  %vm491_vm9 = vcmp.eq.s32.totalorder %v3272_v20, %v3197_v10  ;;  %vm282_vm10 = vcmp.eq.s32.totalorder %v3281_v21, %v3194_v9  ;;  %vm475_vm11 = vcmp.eq.s32.totalorder %v3281_v21, %v3197_v10  ;;  %v3335_v27 = vadd.s32 48, %v3173_v1 }
  0x73   : > { %2469 = vmatprep.subr.msk.mxu0 %vm300_vm0, %v2980_v14  ;;  %2504 = vmatprep.subr.msk.mxu1 %vm493_vm1, %v2980_v14  ;;  %vm297_vm12 = vcmp.eq.s32.totalorder %v3290_v22, %v3194_v9  ;;  %vm490_vm13 = vcmp.eq.s32.totalorder %v3290_v22, %v3197_v10  ;;  %vm281_vm14 = vcmp.eq.s32.totalorder %v3299_v23, %v3194_v9  ;;  %v3344_v28 = vadd.s32 168, %v3173_v1 }
  0x74   : > { %2470 = vmatpush3.msk.msra.mxu0 %vm284_vm2, %v2980_v14  ;;  %2505 = vmatpush3.msk.msra.mxu1 %vm477_vm3, %v2980_v14  ;;  %vm474_vm15 = vcmp.eq.s32.totalorder %v3299_v23, %v3197_v10  ;;  %vm296_vm0 = vcmp.eq.s32.totalorder %v3308_v24, %v3194_v9  ;;  %vm489_vm1 = vcmp.eq.s32.totalorder %v3308_v24, %v3197_v10  ;;  %v3353_v29 = vadd.s32 40, %v3173_v1 }
  0x75   : > { %2471 = vmatprep.subr.msk.mxu0 %vm299_vm4, %v2980_v14  ;;  %2506 = vmatprep.subr.msk.mxu1 %vm492_vm5, %v2980_v14  ;;  %vm280_vm2 = vcmp.eq.s32.totalorder %v3317_v25, %v3194_v9  ;;  %vm473_vm3 = vcmp.eq.s32.totalorder %v3317_v25, %v3197_v10  ;;  %vm295_vm4 = vcmp.eq.s32.totalorder %v3326_v26, %v3194_v9  ;;  %v3362_v30 = vadd.s32 160, %v3173_v1 }
  0x76   : > { %2472 = vmatpush3.msk.msra.mxu0 %vm283_vm6, %v2980_v14  ;;  %2507 = vmatpush3.msk.msra.mxu1 %vm476_vm7, %v2980_v14  ;;  %vm488_vm5 = vcmp.eq.s32.totalorder %v3326_v26, %v3197_v10  ;;  %vm279_vm6 = vcmp.eq.s32.totalorder %v3335_v27, %v3194_v9  ;;  %vm472_vm7 = vcmp.eq.s32.totalorder %v3335_v27, %v3197_v10  ;;  %v3371_v31 = vadd.s32 32, %v3173_v1 }
  0x77   : > { %2473 = vmatprep.subr.msk.mxu0 %vm298_vm8, %v2980_v14  ;;  %2508 = vmatprep.subr.msk.mxu1 %vm491_vm9, %v2980_v14  ;;  %vm294_vm8 = vcmp.eq.s32.totalorder %v3344_v28, %v3194_v9  ;;  %vm487_vm9 = vcmp.eq.s32.totalorder %v3344_v28, %v3197_v10  ;;  %v3380_v32 = vadd.s32 152, %v3173_v1  ;;  %v3389_v33 = vadd.s32 24, %v3173_v1 }
  0x78   : > { %2474 = vmatpush3.msk.msra.mxu0 %vm282_vm10, %v2980_v14  ;;  %2509 = vmatpush3.msk.msra.mxu1 %vm475_vm11, %v2980_v14  ;;  %vm278_vm10 = vcmp.eq.s32.totalorder %v3353_v29, %v3194_v9  ;;  %vm471_vm11 = vcmp.eq.s32.totalorder %v3353_v29, %v3197_v10  ;;  %v3398_v34 = vadd.s32 144, %v3173_v1  ;;  %v3407_v35 = vadd.s32 16, %v3173_v1 }
  0x79   : > { %2475 = vmatprep.subr.msk.mxu0 %vm297_vm12, %v2980_v14  ;;  %2510 = vmatprep.subr.msk.mxu1 %vm490_vm13, %v2980_v14  ;;  %vm293_vm12 = vcmp.eq.s32.totalorder %v3362_v30, %v3194_v9  ;;  %vm486_vm13 = vcmp.eq.s32.totalorder %v3362_v30, %v3197_v10  ;;  %v653_v36 = vsub.s32 2, %v3173_v1  ;;  %v3417_v37 = vadd.s32 136, %v3173_v1 }
  0x7a   : > { %2476 = vmatpush3.msk.msra.mxu0 %vm281_vm14, %v2980_v14  ;;  %2511 = vmatpush3.msk.msra.mxu1 %vm474_vm15, %v2980_v14  ;;  %vm277_vm14 = vcmp.eq.s32.totalorder %v3371_v31, %v3194_v9  ;;  %vm470_vm15 = vcmp.eq.s32.totalorder %v3371_v31, %v3197_v10  ;;  %v842_v38 = vsub.s32 3, %v3173_v1  ;;  %v3427_v39 = vadd.s32 8, %v3173_v1 }
  0x7b   : > { %2477 = vmatprep.subr.msk.mxu0 %vm296_vm0, %v2980_v14  ;;  %2512 = vmatprep.subr.msk.mxu1 %vm489_vm1, %v2980_v14  ;;  %vm292_vm0 = vcmp.eq.s32.totalorder %v3380_v32, %v3194_v9  ;;  %vm485_vm1 = vcmp.eq.s32.totalorder %v3380_v32, %v3197_v10  ;;  %v3436_v40 = vadd.s32 128, %v3173_v1  ;;  %v3447_v42 = vrot.slane %v3185_v6, %v653_v36 }
  0x7c   : > { %2478 = vmatpush3.msk.msra.mxu0 %vm280_vm2, %v2980_v14  ;;  %2513 = vmatpush3.msk.msra.mxu1 %vm473_vm3, %v2980_v14  ;;  %vm276_vm2 = vcmp.eq.s32.totalorder %v3389_v33, %v3194_v9  ;;  %vm469_vm3 = vcmp.eq.s32.totalorder %v3389_v33, %v3197_v10  ;;  %v3456_v43 = vrot.slane %v3185_v6, %v842_v38  ;;  %v1031_v45 = vsub.s32 4, %v3173_v1 }
  0x7d   : > { %2479 = vmatprep.subr.msk.mxu0 %vm295_vm4, %v2980_v14  ;;  %2514 = vmatprep.subr.msk.mxu1 %vm488_vm5, %v2980_v14  ;;  %vm291_vm4 = vcmp.eq.s32.totalorder %v3398_v34, %v3194_v9  ;;  %vm484_vm5 = vcmp.eq.s32.totalorder %v3398_v34, %v3197_v10  ;;  %v1220_v46 = vsub.s32 5, %v3173_v1  ;;  %v1409_v49 = vsub.s32 6, %v3173_v1 }
  0x7e   : > { %2480 = vmatpush3.msk.msra.mxu0 %vm279_vm6, %v2980_v14  ;;  %2515 = vmatpush3.msk.msra.mxu1 %vm472_vm7, %v2980_v14  ;;  %vm275_vm6 = vcmp.eq.s32.totalorder %v3407_v35, %v3194_v9  ;;  %vm468_vm7 = vcmp.eq.s32.totalorder %v3407_v35, %v3197_v10  ;;  %v3637_v47 = vrot.slane %v3185_v6, %v1031_v45  ;;  %v1598_v50 = vsub.s32 7, %v3173_v1 }
  0x7f   : > { %2481 = vmatprep.subr.msk.mxu0 %vm294_vm8, %v2980_v14  ;;  %2516 = vmatprep.subr.msk.mxu1 %vm487_vm9, %v2980_v14  ;;  %vm290_vm8 = vcmp.eq.s32.totalorder %v3417_v37, %v3194_v9  ;;  %vm483_vm9 = vcmp.eq.s32.totalorder %v3417_v37, %v3197_v10  ;;  %v3646_v48 = vrot.slane %v3185_v6, %v1220_v46 }
  0x80   : > { %2482 = vmatpush3.msk.msra.mxu0 %vm278_vm10, %v2980_v14  ;;  %2517 = vmatpush3.msk.msra.mxu1 %vm471_vm11, %v2980_v14  ;;  %vm274_vm10 = vcmp.eq.s32.totalorder %v3427_v39, %v3194_v9  ;;  %vm467_vm11 = vcmp.eq.s32.totalorder %v3427_v39, %v3197_v10  ;;  %v3778_v51 = vrot.slane %v3185_v6, %v1409_v49 }
  0x81   : > { %2483 = vmatprep.subr.msk.mxu0 %vm293_vm12, %v2980_v14  ;;  %2518 = vmatprep.subr.msk.mxu1 %vm486_vm13, %v2980_v14  ;;  %vm289_vm12 = vcmp.eq.s32.totalorder %v3436_v40, %v3194_v9  ;;  %vm482_vm13 = vcmp.eq.s32.totalorder %v3436_v40, %v3197_v10  ;;  %v3787_v52 = vrot.slane %v3185_v6, %v1598_v50 }
  0x82   : > { %2484 = vmatpush3.msk.msra.mxu0 %vm277_vm14, %v2980_v14  ;;  %2519 = vmatpush3.msk.msra.mxu1 %vm470_vm15, %v2980_v14  ;;  %vm273_vm14 = vcmp.eq.s32.totalorder %v3173_v1, %v3194_v9  ;;  %vm466_vm15 = vcmp.eq.s32.totalorder %v3173_v1, %v3197_v10 }
  0x83   : > { %2485 = vmatprep.subr.msk.mxu0 %vm292_vm0, %v2980_v14  ;;  %2520 = vmatprep.subr.msk.mxu1 %vm485_vm1, %v2980_v14  ;;  %vm686_vm0 = vcmp.eq.s32.totalorder %v3178_v4, %v3447_v42  ;;  %vm875_vm1 = vcmp.eq.s32.totalorder %v3178_v4, %v3456_v43 }
  0x84   : > { %2486 = vmatpush3.msk.msra.mxu0 %vm276_vm2, %v2980_v14  ;;  %2521 = vmatpush3.msk.msra.mxu1 %vm469_vm3, %v2980_v14  ;;  %vm670_vm2 = vcmp.eq.s32.totalorder %v3181_v5, %v3447_v42  ;;  %vm859_vm3 = vcmp.eq.s32.totalorder %v3181_v5, %v3456_v43 }
  0x85   : > { %2487 = vmatprep.subr.msk.mxu0 %vm291_vm4, %v2980_v14  ;;  %2522 = vmatprep.subr.msk.mxu1 %vm484_vm5, %v2980_v14  ;;  %vm685_vm4 = vcmp.eq.s32.totalorder %v3188_v7, %v3447_v42  ;;  %vm874_vm5 = vcmp.eq.s32.totalorder %v3188_v7, %v3456_v43 }
  0x86   : > { %2488 = vmatpush3.msk.msra.mxu0 %vm275_vm6, %v2980_v14  ;;  %2523 = vmatpush3.msk.msra.mxu1 %vm468_vm7, %v2980_v14  ;;  %vm669_vm6 = vcmp.eq.s32.totalorder %v3191_v8, %v3447_v42  ;;  %vm858_vm7 = vcmp.eq.s32.totalorder %v3191_v8, %v3456_v43 }
  0x87   : > { %2489 = vmatprep.subr.msk.mxu0 %vm290_vm8, %v2980_v14  ;;  %2524 = vmatprep.subr.msk.mxu1 %vm483_vm9, %v2980_v14  ;;  %vm684_vm8 = vcmp.eq.s32.totalorder %v3200_v11, %v3447_v42  ;;  %vm873_vm9 = vcmp.eq.s32.totalorder %v3200_v11, %v3456_v43 }
  0x88   : > { %2490 = vmatpush3.msk.msra.mxu0 %vm274_vm10, %v2980_v14  ;;  %2525 = vmatpush3.msk.msra.mxu1 %vm467_vm11, %v2980_v14  ;;  %vm668_vm10 = vcmp.eq.s32.totalorder %v3203_v12, %v3447_v42  ;;  %vm857_vm11 = vcmp.eq.s32.totalorder %v3203_v12, %v3456_v43 }
  0x89   : > { %2491 = vmatprep.subr.msk.mxu0 %vm289_vm12, %v2980_v14  ;;  %2526 = vmatprep.subr.msk.mxu1 %vm482_vm13, %v2980_v14  ;;  %vm683_vm12 = vcmp.eq.s32.totalorder %v3206_v13, %v3447_v42  ;;  %vm872_vm13 = vcmp.eq.s32.totalorder %v3206_v13, %v3456_v43 }
  0x8a   : > { %2492 = vmatpush3.msk.msra.mxu0 %vm273_vm14, %v2980_v14  ;;  %2527 = vmatpush3.msk.msra.mxu1 %vm466_vm15, %v2980_v14  ;;  %vm667_vm14 = vcmp.eq.s32.totalorder %v3225_v15, %v3447_v42  ;;  %vm856_vm15 = vcmp.eq.s32.totalorder %v3225_v15, %v3456_v43 }
  0x8b   : > { %437 = vmatmul.mubr.f32.vlgmr.msra.gmra.mxu0 %v3438_v41  ;;  %627 = vmatmul.mubr.f32.vlgmr.msra.gmra.mxu1 %v3438_v41 }
  0x8c   : > { %2531 = vmatprep.subr.msk.mxu0 %vm686_vm0, %v2980_v14  ;;  %2566 = vmatprep.subr.msk.mxu1 %vm875_vm1, %v2980_v14  ;;  %vm682_vm0 = vcmp.eq.s32.totalorder %v3236_v16, %v3447_v42  ;;  %vm871_vm1 = vcmp.eq.s32.totalorder %v3236_v16, %v3456_v43 }
  0x8d   : > { %2532 = vmatpush3.msk.msra.mxu0 %vm670_vm2, %v2980_v14  ;;  %2567 = vmatpush3.msk.msra.mxu1 %vm859_vm3, %v2980_v14  ;;  %vm666_vm2 = vcmp.eq.s32.totalorder %v3245_v17, %v3447_v42  ;;  %vm855_vm3 = vcmp.eq.s32.totalorder %v3245_v17, %v3456_v43 }
  0x8e   : > { %2533 = vmatprep.subr.msk.mxu0 %vm685_vm4, %v2980_v14  ;;  %2568 = vmatprep.subr.msk.mxu1 %vm874_vm5, %v2980_v14  ;;  %vm681_vm4 = vcmp.eq.s32.totalorder %v3254_v18, %v3447_v42  ;;  %vm870_vm5 = vcmp.eq.s32.totalorder %v3254_v18, %v3456_v43 }
  0x8f   : > { %2534 = vmatpush3.msk.msra.mxu0 %vm669_vm6, %v2980_v14  ;;  %2569 = vmatpush3.msk.msra.mxu1 %vm858_vm7, %v2980_v14  ;;  %vm665_vm6 = vcmp.eq.s32.totalorder %v3263_v19, %v3447_v42  ;;  %vm854_vm7 = vcmp.eq.s32.totalorder %v3263_v19, %v3456_v43 }
  0x90   : > { %2535 = vmatprep.subr.msk.mxu0 %vm684_vm8, %v2980_v14  ;;  %2570 = vmatprep.subr.msk.mxu1 %vm873_vm9, %v2980_v14  ;;  %vm680_vm8 = vcmp.eq.s32.totalorder %v3272_v20, %v3447_v42  ;;  %vm869_vm9 = vcmp.eq.s32.totalorder %v3272_v20, %v3456_v43 }
  0x91   : > { %2536 = vmatpush3.msk.msra.mxu0 %vm668_vm10, %v2980_v14  ;;  %2571 = vmatpush3.msk.msra.mxu1 %vm857_vm11, %v2980_v14  ;;  %vm664_vm10 = vcmp.eq.s32.totalorder %v3281_v21, %v3447_v42  ;;  %vm853_vm11 = vcmp.eq.s32.totalorder %v3281_v21, %v3456_v43 }
  0x92   : > { %2537 = vmatprep.subr.msk.mxu0 %vm683_vm12, %v2980_v14  ;;  %2572 = vmatprep.subr.msk.mxu1 %vm872_vm13, %v2980_v14  ;;  %vm679_vm12 = vcmp.eq.s32.totalorder %v3290_v22, %v3447_v42  ;;  %vm868_vm13 = vcmp.eq.s32.totalorder %v3290_v22, %v3456_v43 }
  0x93   : > { %2538 = vmatpush3.msk.msra.mxu0 %vm667_vm14, %v2980_v14  ;;  %2573 = vmatpush3.msk.msra.mxu1 %vm856_vm15, %v2980_v14  ;;  %vm663_vm14 = vcmp.eq.s32.totalorder %v3299_v23, %v3447_v42  ;;  %vm852_vm15 = vcmp.eq.s32.totalorder %v3299_v23, %v3456_v43 }
  0x94   : > { %2539 = vmatprep.subr.msk.mxu0 %vm682_vm0, %v2980_v14  ;;  %2574 = vmatprep.subr.msk.mxu1 %vm871_vm1, %v2980_v14  ;;  %vm678_vm0 = vcmp.eq.s32.totalorder %v3308_v24, %v3447_v42  ;;  %vm867_vm1 = vcmp.eq.s32.totalorder %v3308_v24, %v3456_v43 }
  0x95   : > { %2540 = vmatpush3.msk.msra.mxu0 %vm666_vm2, %v2980_v14  ;;  %2575 = vmatpush3.msk.msra.mxu1 %vm855_vm3, %v2980_v14  ;;  %vm662_vm2 = vcmp.eq.s32.totalorder %v3317_v25, %v3447_v42  ;;  %vm851_vm3 = vcmp.eq.s32.totalorder %v3317_v25, %v3456_v43 }
  0x96   : > { %2541 = vmatprep.subr.msk.mxu0 %vm681_vm4, %v2980_v14  ;;  %2576 = vmatprep.subr.msk.mxu1 %vm870_vm5, %v2980_v14  ;;  %vm677_vm4 = vcmp.eq.s32.totalorder %v3326_v26, %v3447_v42  ;;  %vm866_vm5 = vcmp.eq.s32.totalorder %v3326_v26, %v3456_v43 }
  0x97   : > { %2542 = vmatpush3.msk.msra.mxu0 %vm665_vm6, %v2980_v14  ;;  %2577 = vmatpush3.msk.msra.mxu1 %vm854_vm7, %v2980_v14  ;;  %vm661_vm6 = vcmp.eq.s32.totalorder %v3335_v27, %v3447_v42  ;;  %vm850_vm7 = vcmp.eq.s32.totalorder %v3335_v27, %v3456_v43 }
  0x98   : > { %2543 = vmatprep.subr.msk.mxu0 %vm680_vm8, %v2980_v14  ;;  %2578 = vmatprep.subr.msk.mxu1 %vm869_vm9, %v2980_v14  ;;  %vm676_vm8 = vcmp.eq.s32.totalorder %v3344_v28, %v3447_v42  ;;  %vm865_vm9 = vcmp.eq.s32.totalorder %v3344_v28, %v3456_v43 }
  0x99   : > { %2544 = vmatpush3.msk.msra.mxu0 %vm664_vm10, %v2980_v14  ;;  %2579 = vmatpush3.msk.msra.mxu1 %vm853_vm11, %v2980_v14  ;;  %vm660_vm10 = vcmp.eq.s32.totalorder %v3353_v29, %v3447_v42  ;;  %vm849_vm11 = vcmp.eq.s32.totalorder %v3353_v29, %v3456_v43 }
  0x9a   : > { %2545 = vmatprep.subr.msk.mxu0 %vm679_vm12, %v2980_v14  ;;  %2580 = vmatprep.subr.msk.mxu1 %vm868_vm13, %v2980_v14  ;;  %vm675_vm12 = vcmp.eq.s32.totalorder %v3362_v30, %v3447_v42  ;;  %vm864_vm13 = vcmp.eq.s32.totalorder %v3362_v30, %v3456_v43 }
  0x9b   : > { %2546 = vmatpush3.msk.msra.mxu0 %vm663_vm14, %v2980_v14  ;;  %2581 = vmatpush3.msk.msra.mxu1 %vm852_vm15, %v2980_v14  ;;  %vm659_vm14 = vcmp.eq.s32.totalorder %v3371_v31, %v3447_v42  ;;  %vm848_vm15 = vcmp.eq.s32.totalorder %v3371_v31, %v3456_v43 }
  0x9c   : > { %2547 = vmatprep.subr.msk.mxu0 %vm678_vm0, %v2980_v14  ;;  %2582 = vmatprep.subr.msk.mxu1 %vm867_vm1, %v2980_v14  ;;  %vm674_vm0 = vcmp.eq.s32.totalorder %v3380_v32, %v3447_v42  ;;  %vm863_vm1 = vcmp.eq.s32.totalorder %v3380_v32, %v3456_v43 }
  0x9d   : > { %2548 = vmatpush3.msk.msra.mxu0 %vm662_vm2, %v2980_v14  ;;  %2583 = vmatpush3.msk.msra.mxu1 %vm851_vm3, %v2980_v14  ;;  %vm658_vm2 = vcmp.eq.s32.totalorder %v3389_v33, %v3447_v42  ;;  %vm847_vm3 = vcmp.eq.s32.totalorder %v3389_v33, %v3456_v43 }
  0x9e   : > { %2549 = vmatprep.subr.msk.mxu0 %vm677_vm4, %v2980_v14  ;;  %2584 = vmatprep.subr.msk.mxu1 %vm866_vm5, %v2980_v14  ;;  %vm673_vm4 = vcmp.eq.s32.totalorder %v3398_v34, %v3447_v42  ;;  %vm862_vm5 = vcmp.eq.s32.totalorder %v3398_v34, %v3456_v43 }
  0x9f   : > { %2550 = vmatpush3.msk.msra.mxu0 %vm661_vm6, %v2980_v14  ;;  %2585 = vmatpush3.msk.msra.mxu1 %vm850_vm7, %v2980_v14  ;;  %vm657_vm6 = vcmp.eq.s32.totalorder %v3407_v35, %v3447_v42  ;;  %vm846_vm7 = vcmp.eq.s32.totalorder %v3407_v35, %v3456_v43 }
  0xa0   : > { %2551 = vmatprep.subr.msk.mxu0 %vm676_vm8, %v2980_v14  ;;  %2586 = vmatprep.subr.msk.mxu1 %vm865_vm9, %v2980_v14  ;;  %vm672_vm8 = vcmp.eq.s32.totalorder %v3417_v37, %v3447_v42  ;;  %vm861_vm9 = vcmp.eq.s32.totalorder %v3417_v37, %v3456_v43 }
  0xa1   : > { %2552 = vmatpush3.msk.msra.mxu0 %vm660_vm10, %v2980_v14  ;;  %2587 = vmatpush3.msk.msra.mxu1 %vm849_vm11, %v2980_v14  ;;  %vm1052_vm10 = vcmp.eq.s32.totalorder %v3380_v32, %v3637_v47  ;;  %vm1241_vm11 = vcmp.eq.s32.totalorder %v3380_v32, %v3646_v48 }
  0xa2   : > { %2553 = vmatprep.subr.msk.mxu0 %vm675_vm12, %v2980_v14  ;;  %2588 = vmatprep.subr.msk.mxu1 %vm864_vm13, %v2980_v14  ;;  %vm656_vm12 = vcmp.eq.s32.totalorder %v3427_v39, %v3447_v42  ;;  %vm845_vm13 = vcmp.eq.s32.totalorder %v3427_v39, %v3456_v43 }
  0xa3   : > { %2554 = vmatpush3.msk.msra.mxu0 %vm659_vm14, %v2980_v14  ;;  %2589 = vmatpush3.msk.msra.mxu1 %vm848_vm15, %v2980_v14  ;;  %vm671_vm14 = vcmp.eq.s32.totalorder %v3436_v40, %v3447_v42  ;;  %vm860_vm15 = vcmp.eq.s32.totalorder %v3436_v40, %v3456_v43 }
  0xa4   : > { %2555 = vmatprep.subr.msk.mxu0 %vm674_vm0, %v2980_v14  ;;  %2590 = vmatprep.subr.msk.mxu1 %vm863_vm1, %v2980_v14  ;;  %vm1035_vm0 = vcmp.eq.s32.totalorder %v3407_v35, %v3637_v47  ;;  %vm1224_vm1 = vcmp.eq.s32.totalorder %v3407_v35, %v3646_v48 }
  0xa5   : > { %2556 = vmatpush3.msk.msra.mxu0 %vm658_vm2, %v2980_v14  ;;  %2591 = vmatpush3.msk.msra.mxu1 %vm847_vm3, %v2980_v14  ;;  %vm655_vm2 = vcmp.eq.s32.totalorder %v3173_v1, %v3447_v42  ;;  %vm844_vm3 = vcmp.eq.s32.totalorder %v3173_v1, %v3456_v43 }
  0xa6   : > { %2557 = vmatprep.subr.msk.mxu0 %vm673_vm4, %v2980_v14  ;;  %2592 = vmatprep.subr.msk.mxu1 %vm862_vm5, %v2980_v14  ;;  %vm1049_vm4 = vcmp.eq.s32.totalorder %v3436_v40, %v3637_v47  ;;  %vm1056_vm5 = vcmp.eq.s32.totalorder %v3308_v24, %v3637_v47 }
  0xa7   : > { %2558 = vmatpush3.msk.msra.mxu0 %vm657_vm6, %v2980_v14  ;;  %2593 = vmatpush3.msk.msra.mxu1 %vm846_vm7, %v2980_v14  ;;  %vm1064_vm6 = vcmp.eq.s32.totalorder %v3178_v4, %v3637_v47  ;;  %vm1253_vm7 = vcmp.eq.s32.totalorder %v3178_v4, %v3646_v48 }
  0xa8   : > { %2559 = vmatprep.subr.msk.mxu0 %vm672_vm8, %v2980_v14  ;;  %2594 = vmatprep.subr.msk.mxu1 %vm861_vm9, %v2980_v14  ;;  %vm1048_vm8 = vcmp.eq.s32.totalorder %v3181_v5, %v3637_v47  ;;  %vm1237_vm9 = vcmp.eq.s32.totalorder %v3181_v5, %v3646_v48 }
  0xa9   : > { %2560 = vmatpush3.msk.msra.mxu0 %vm656_vm12, %v2980_v14  ;;  %2595 = vmatpush3.msk.msra.mxu1 %vm845_vm13, %v2980_v14  ;;  %vm1063_vm12 = vcmp.eq.s32.totalorder %v3188_v7, %v3637_v47  ;;  %vm1252_vm13 = vcmp.eq.s32.totalorder %v3188_v7, %v3646_v48 }
  0xaa   : > { %2561 = vmatprep.subr.msk.mxu0 %vm671_vm14, %v2980_v14  ;;  %2596 = vmatprep.subr.msk.mxu1 %vm860_vm15, %v2980_v14  ;;  %vm1047_vm14 = vcmp.eq.s32.totalorder %v3191_v8, %v3637_v47  ;;  %vm1236_vm15 = vcmp.eq.s32.totalorder %v3191_v8, %v3646_v48 }
  0xab   : > { %2562 = vmatpush3.msk.msra.mxu0 %vm655_vm2, %v2980_v14  ;;  %815 = vmatprep.mubr.f32.mxu0 %v3472_v44  ;;  %vm1062_vm2 = vcmp.eq.s32.totalorder %v3200_v11, %v3637_v47 }
  0xac   : > { %2597 = vmatpush3.msk.msra.mxu1 %vm844_vm3, %v2980_v14  ;;  %1004 = vmatprep.mubr.f32.mxu1 %v3472_v44  ;;  %vm1251_vm3 = vcmp.eq.s32.totalorder %v3200_v11, %v3646_v48 }
  0xad   : > { %816 = vmatmul.mubr.f32.vlgmr.msra.gmra.mxu0 %v3438_v41  ;;  %1005 = vmatmul.mubr.f32.vlgmr.msra.gmra.mxu1 %v3438_v41 }
  0xae   : > { %2601 = vmatprep.subr.msk.mxu0 %vm1064_vm6, %v2980_v14  ;;  %2636 = vmatprep.subr.msk.mxu1 %vm1253_vm7, %v2980_v14  ;;  %vm1046_vm6 = vcmp.eq.s32.totalorder %v3203_v12, %v3637_v47  ;;  %vm1235_vm7 = vcmp.eq.s32.totalorder %v3203_v12, %v3646_v48 }
  0xaf   : > { %2602 = vmatpush3.msk.msra.mxu0 %vm1048_vm8, %v2980_v14  ;;  %2637 = vmatpush3.msk.msra.mxu1 %vm1237_vm9, %v2980_v14  ;;  %vm1061_vm8 = vcmp.eq.s32.totalorder %v3206_v13, %v3637_v47  ;;  %vm1250_vm9 = vcmp.eq.s32.totalorder %v3206_v13, %v3646_v48 }
  0xb0   : > { %2603 = vmatprep.subr.msk.mxu0 %vm1063_vm12, %v2980_v14  ;;  %2638 = vmatprep.subr.msk.mxu1 %vm1252_vm13, %v2980_v14  ;;  %vm1045_vm12 = vcmp.eq.s32.totalorder %v3225_v15, %v3637_v47  ;;  %vm1234_vm13 = vcmp.eq.s32.totalorder %v3225_v15, %v3646_v48 }
  0xb1   : > { %2604 = vmatpush3.msk.msra.mxu0 %vm1047_vm14, %v2980_v14  ;;  %2639 = vmatpush3.msk.msra.mxu1 %vm1236_vm15, %v2980_v14  ;;  %vm1060_vm14 = vcmp.eq.s32.totalorder %v3236_v16, %v3637_v47  ;;  %vm1249_vm15 = vcmp.eq.s32.totalorder %v3236_v16, %v3646_v48 }
  0xb2   : > { %2605 = vmatprep.subr.msk.mxu0 %vm1062_vm2, %v2980_v14  ;;  %2640 = vmatprep.subr.msk.mxu1 %vm1251_vm3, %v2980_v14  ;;  %vm1044_vm2 = vcmp.eq.s32.totalorder %v3245_v17, %v3637_v47  ;;  %vm1233_vm3 = vcmp.eq.s32.totalorder %v3245_v17, %v3646_v48 }
  0xb3   : > { %2606 = vmatpush3.msk.msra.mxu0 %vm1046_vm6, %v2980_v14  ;;  %2641 = vmatpush3.msk.msra.mxu1 %vm1235_vm7, %v2980_v14  ;;  %vm1059_vm6 = vcmp.eq.s32.totalorder %v3254_v18, %v3637_v47  ;;  %vm1248_vm7 = vcmp.eq.s32.totalorder %v3254_v18, %v3646_v48 }
  0xb4   : > { %2607 = vmatprep.subr.msk.mxu0 %vm1061_vm8, %v2980_v14  ;;  %2642 = vmatprep.subr.msk.mxu1 %vm1250_vm9, %v2980_v14  ;;  %vm1043_vm8 = vcmp.eq.s32.totalorder %v3263_v19, %v3637_v47  ;;  %vm1232_vm9 = vcmp.eq.s32.totalorder %v3263_v19, %v3646_v48 }
  0xb5   : > { %2608 = vmatpush3.msk.msra.mxu0 %vm1045_vm12, %v2980_v14  ;;  %2643 = vmatpush3.msk.msra.mxu1 %vm1234_vm13, %v2980_v14  ;;  %vm1058_vm12 = vcmp.eq.s32.totalorder %v3272_v20, %v3637_v47  ;;  %vm1247_vm13 = vcmp.eq.s32.totalorder %v3272_v20, %v3646_v48 }
  0xb6   : > { %2609 = vmatprep.subr.msk.mxu0 %vm1060_vm14, %v2980_v14  ;;  %2644 = vmatprep.subr.msk.mxu1 %vm1249_vm15, %v2980_v14  ;;  %vm1042_vm14 = vcmp.eq.s32.totalorder %v3281_v21, %v3637_v47  ;;  %vm1231_vm15 = vcmp.eq.s32.totalorder %v3281_v21, %v3646_v48 }
  0xb7   : > { %2610 = vmatpush3.msk.msra.mxu0 %vm1044_vm2, %v2980_v14  ;;  %2645 = vmatpush3.msk.msra.mxu1 %vm1233_vm3, %v2980_v14  ;;  %vm1057_vm2 = vcmp.eq.s32.totalorder %v3290_v22, %v3637_v47  ;;  %vm1246_vm3 = vcmp.eq.s32.totalorder %v3290_v22, %v3646_v48 }
  0xb8   : > { %2611 = vmatprep.subr.msk.mxu0 %vm1059_vm6, %v2980_v14  ;;  %2646 = vmatprep.subr.msk.mxu1 %vm1248_vm7, %v2980_v14  ;;  %vm1041_vm6 = vcmp.eq.s32.totalorder %v3299_v23, %v3637_v47  ;;  %vm1230_vm7 = vcmp.eq.s32.totalorder %v3299_v23, %v3646_v48 }
  0xb9   : > { %2612 = vmatpush3.msk.msra.mxu0 %vm1043_vm8, %v2980_v14  ;;  %2647 = vmatpush3.msk.msra.mxu1 %vm1232_vm9, %v2980_v14  ;;  %vm1229_vm9 = vcmp.eq.s32.totalorder %v3317_v25, %v3646_v48  ;;  %vm1039_vm8 = vcmp.eq.s32.totalorder %v3335_v27, %v3637_v47 }
  0xba   : > { %2613 = vmatprep.subr.msk.mxu0 %vm1058_vm12, %v2980_v14  ;;  %2648 = vmatprep.subr.msk.mxu1 %vm1247_vm13, %v2980_v14  ;;  %vm1245_vm12 = vcmp.eq.s32.totalorder %v3308_v24, %v3646_v48  ;;  %vm1040_vm13 = vcmp.eq.s32.totalorder %v3317_v25, %v3637_v47 }
  0xbb   : > { %2614 = vmatpush3.msk.msra.mxu0 %vm1042_vm14, %v2980_v14  ;;  %2649 = vmatpush3.msk.msra.mxu1 %vm1231_vm15, %v2980_v14  ;;  %vm1413_vm14 = vcmp.eq.s32.totalorder %v3407_v35, %v3778_v51  ;;  %vm1228_vm15 = vcmp.eq.s32.totalorder %v3335_v27, %v3646_v48 }
  0xbc   : > { %2615 = vmatprep.subr.msk.mxu0 %vm1057_vm2, %v2980_v14  ;;  %2650 = vmatprep.subr.msk.mxu1 %vm1246_vm3, %v2980_v14  ;;  %vm1055_vm2 = vcmp.eq.s32.totalorder %v3326_v26, %v3637_v47  ;;  %vm1244_vm3 = vcmp.eq.s32.totalorder %v3326_v26, %v3646_v48 }
  0xbd   : > { %2616 = vmatpush3.msk.msra.mxu0 %vm1041_vm6, %v2980_v14  ;;  %2651 = vmatpush3.msk.msra.mxu1 %vm1230_vm7, %v2980_v14  ;;  %vm1038_vm7 = vcmp.eq.s32.totalorder %v3353_v29, %v3637_v47  ;;  %vm1227_vm6 = vcmp.eq.s32.totalorder %v3353_v29, %v3646_v48 }
  0xbe   : > { %2617 = vmatprep.subr.msk.mxu0 %vm1056_vm5, %v2980_v14  ;;  %2652 = vmatprep.subr.msk.mxu1 %vm1245_vm12, %v2980_v14  ;;  %vm1054_vm5 = vcmp.eq.s32.totalorder %v3344_v28, %v3637_v47  ;;  %vm1243_vm12 = vcmp.eq.s32.totalorder %v3344_v28, %v3646_v48 }
  0xbf   : > { %2618 = vmatpush3.msk.msra.mxu0 %vm1040_vm13, %v2980_v14  ;;  %2653 = vmatpush3.msk.msra.mxu1 %vm1229_vm9, %v2980_v14  ;;  %vm1053_vm9 = vcmp.eq.s32.totalorder %v3362_v30, %v3637_v47  ;;  %vm1242_vm13 = vcmp.eq.s32.totalorder %v3362_v30, %v3646_v48 }
  0xc0   : > { %2619 = vmatprep.subr.msk.mxu0 %vm1055_vm2, %v2980_v14  ;;  %2654 = vmatprep.subr.msk.mxu1 %vm1244_vm3, %v2980_v14  ;;  %vm1037_vm2 = vcmp.eq.s32.totalorder %v3371_v31, %v3637_v47  ;;  %vm1226_vm3 = vcmp.eq.s32.totalorder %v3371_v31, %v3646_v48 }
  0xc1   : > { %2620 = vmatpush3.msk.msra.mxu0 %vm1039_vm8, %v2980_v14  ;;  %2655 = vmatpush3.msk.msra.mxu1 %vm1228_vm15, %v2980_v14  ;;  %vm1036_vm8 = vcmp.eq.s32.totalorder %v3389_v33, %v3637_v47  ;;  %vm1225_vm15 = vcmp.eq.s32.totalorder %v3389_v33, %v3646_v48 }
  0xc2   : > { %2621 = vmatprep.subr.msk.mxu0 %vm1054_vm5, %v2980_v14  ;;  %2656 = vmatprep.subr.msk.mxu1 %vm1243_vm12, %v2980_v14  ;;  %vm1051_vm5 = vcmp.eq.s32.totalorder %v3398_v34, %v3637_v47  ;;  %vm1239_vm12 = vcmp.eq.s32.totalorder %v3417_v37, %v3646_v48 }
  0xc3   : > { %2622 = vmatpush3.msk.msra.mxu0 %vm1038_vm7, %v2980_v14  ;;  %2657 = vmatpush3.msk.msra.mxu1 %vm1227_vm6, %v2980_v14  ;;  %vm1240_vm6 = vcmp.eq.s32.totalorder %v3398_v34, %v3646_v48  ;;  %vm1050_vm7 = vcmp.eq.s32.totalorder %v3417_v37, %v3637_v47 }
  0xc4   : > { %2623 = vmatprep.subr.msk.mxu0 %vm1053_vm9, %v2980_v14  ;;  %2658 = vmatprep.subr.msk.mxu1 %vm1242_vm13, %v2980_v14  ;;  %vm1033_vm9 = vcmp.eq.s32.totalorder %v3173_v1, %v3637_v47  ;;  %vm1222_vm13 = vcmp.eq.s32.totalorder %v3173_v1, %v3646_v48 }
  0xc5   : > { %2624 = vmatpush3.msk.msra.mxu0 %vm1037_vm2, %v2980_v14  ;;  %2659 = vmatpush3.msk.msra.mxu1 %vm1226_vm3, %v2980_v14  ;;  %vm1631_vm2 = vcmp.eq.s32.totalorder %v3178_v4, %v3787_v52  ;;  %vm1615_vm3 = vcmp.eq.s32.totalorder %v3181_v5, %v3787_v52 }
  0xc6   : > { %2625 = vmatprep.subr.msk.mxu0 %vm1052_vm10, %v2980_v14  ;;  %2660 = vmatprep.subr.msk.mxu1 %vm1241_vm11, %v2980_v14  ;;  %vm1034_vm10 = vcmp.eq.s32.totalorder %v3427_v39, %v3637_v47  ;;  %vm1223_vm11 = vcmp.eq.s32.totalorder %v3427_v39, %v3646_v48 }
  0xc7   : > { %2626 = vmatpush3.msk.msra.mxu0 %vm1036_vm8, %v2980_v14  ;;  %2661 = vmatpush3.msk.msra.mxu1 %vm1225_vm15, %v2980_v14  ;;  %vm1441_vm8 = vcmp.eq.s32.totalorder %v3188_v7, %v3778_v51  ;;  %vm1630_vm15 = vcmp.eq.s32.totalorder %v3188_v7, %v3787_v52 }
  0xc8   : > { %2627 = vmatprep.subr.msk.mxu0 %vm1051_vm5, %v2980_v14  ;;  %2662 = vmatprep.subr.msk.mxu1 %vm1240_vm6, %v2980_v14  ;;  %vm1425_vm5 = vcmp.eq.s32.totalorder %v3191_v8, %v3778_v51  ;;  %vm1614_vm6 = vcmp.eq.s32.totalorder %v3191_v8, %v3787_v52 }
  0xc9   : > { %2628 = vmatpush3.msk.msra.mxu0 %vm1035_vm0, %v2980_v14  ;;  %2663 = vmatpush3.msk.msra.mxu1 %vm1224_vm1, %v2980_v14  ;;  %vm4283_vm0 = vcmp.eq.s32.totalorder %v3436_v40, %v3646_v48  ;;  %vm1442_vm1 = vcmp.eq.s32.totalorder %v3178_v4, %v3778_v51 }
  0xca   : > { %2629 = vmatprep.subr.msk.mxu0 %vm1050_vm7, %v2980_v14  ;;  %2664 = vmatprep.subr.msk.mxu1 %vm1239_vm12, %v2980_v14  ;;  %vm1440_vm7 = vcmp.eq.s32.totalorder %v3200_v11, %v3778_v51  ;;  %vm1629_vm12 = vcmp.eq.s32.totalorder %v3200_v11, %v3787_v52 }
  0xcb   : > { %2630 = vmatpush3.msk.msra.mxu0 %vm1034_vm10, %v2980_v14  ;;  %2665 = vmatpush3.msk.msra.mxu1 %vm1223_vm11, %v2980_v14  ;;  %vm1424_vm10 = vcmp.eq.s32.totalorder %v3203_v12, %v3778_v51  ;;  %vm1613_vm11 = vcmp.eq.s32.totalorder %v3203_v12, %v3787_v52 }
  0xcc   : > { %2631 = vmatprep.subr.msk.mxu0 %vm1049_vm4, %v2980_v14  ;;  %2666 = vmatprep.subr.msk.mxu1 %vm4283_vm0, %v2980_v14  ;;  %vm1426_vm4 = vcmp.eq.s32.totalorder %v3181_v5, %v3778_v51  ;;  %vm1423_vm0 = vcmp.eq.s32.totalorder %v3225_v15, %v3778_v51 }
  0xcd   : > { %2632 = vmatpush3.msk.msra.mxu0 %vm1033_vm9, %v2980_v14  ;;  %1193 = vmatprep.mubr.f32.mxu0 %v3472_v44  ;;  %vm1439_vm9 = vcmp.eq.s32.totalorder %v3206_v13, %v3778_v51 }
  0xce   : > { %2667 = vmatpush3.msk.msra.mxu1 %vm1222_vm13, %v2980_v14  ;;  %1382 = vmatprep.mubr.f32.mxu1 %v3472_v44  ;;  %vm1628_vm13 = vcmp.eq.s32.totalorder %v3206_v13, %v3787_v52 }
  0xcf   : > { %1194 = vmatmul.mubr.f32.vlgmr.msra.gmra.mxu0 %v3438_v41  ;;  %1383 = vmatmul.mubr.f32.vlgmr.msra.gmra.mxu1 %v3438_v41 }
  0xd0   : > { %2671 = vmatprep.subr.msk.mxu0 %vm1442_vm1, %v2980_v14  ;;  %2706 = vmatprep.subr.msk.mxu1 %vm1631_vm2, %v2980_v14  ;;  %vm1612_vm1 = vcmp.eq.s32.totalorder %v3225_v15, %v3787_v52  ;;  %vm1438_vm2 = vcmp.eq.s32.totalorder %v3236_v16, %v3778_v51 }
  0xd1   : > { %2672 = vmatpush3.msk.msra.mxu0 %vm1426_vm4, %v2980_v14  ;;  %2707 = vmatpush3.msk.msra.mxu1 %vm1615_vm3, %v2980_v14  ;;  %vm1627_vm4 = vcmp.eq.s32.totalorder %v3236_v16, %v3787_v52  ;;  %vm1422_vm3 = vcmp.eq.s32.totalorder %v3245_v17, %v3778_v51 }
  0xd2   : > { %2673 = vmatprep.subr.msk.mxu0 %vm1441_vm8, %v2980_v14  ;;  %2708 = vmatprep.subr.msk.mxu1 %vm1630_vm15, %v2980_v14  ;;  %vm1611_vm8 = vcmp.eq.s32.totalorder %v3245_v17, %v3787_v52  ;;  %vm1437_vm15 = vcmp.eq.s32.totalorder %v3254_v18, %v3778_v51 }
  0xd3   : > { %2674 = vmatpush3.msk.msra.mxu0 %vm1425_vm5, %v2980_v14  ;;  %2709 = vmatpush3.msk.msra.mxu1 %vm1614_vm6, %v2980_v14  ;;  %vm1626_vm5 = vcmp.eq.s32.totalorder %v3254_v18, %v3787_v52  ;;  %vm1421_vm6 = vcmp.eq.s32.totalorder %v3263_v19, %v3778_v51 }
  0xd4   : > { %2675 = vmatprep.subr.msk.mxu0 %vm1440_vm7, %v2980_v14  ;;  %2710 = vmatprep.subr.msk.mxu1 %vm1629_vm12, %v2980_v14  ;;  %vm1610_vm7 = vcmp.eq.s32.totalorder %v3263_v19, %v3787_v52  ;;  %vm1436_vm12 = vcmp.eq.s32.totalorder %v3272_v20, %v3778_v51 }
  0xd5   : > { %2676 = vmatpush3.msk.msra.mxu0 %vm1424_vm10, %v2980_v14  ;;  %2711 = vmatpush3.msk.msra.mxu1 %vm1613_vm11, %v2980_v14  ;;  %vm1625_vm10 = vcmp.eq.s32.totalorder %v3272_v20, %v3787_v52  ;;  %vm1420_vm11 = vcmp.eq.s32.totalorder %v3281_v21, %v3778_v51 }
  0xd6   : > { %2677 = vmatprep.subr.msk.mxu0 %vm1439_vm9, %v2980_v14  ;;  %2712 = vmatprep.subr.msk.mxu1 %vm1628_vm13, %v2980_v14  ;;  %vm1609_vm9 = vcmp.eq.s32.totalorder %v3281_v21, %v3787_v52  ;;  %vm1435_vm13 = vcmp.eq.s32.totalorder %v3290_v22, %v3778_v51 }
  0xd7   : > { %2678 = vmatpush3.msk.msra.mxu0 %vm1423_vm0, %v2980_v14  ;;  %2713 = vmatpush3.msk.msra.mxu1 %vm1612_vm1, %v2980_v14  ;;  %vm1624_vm0 = vcmp.eq.s32.totalorder %v3290_v22, %v3787_v52  ;;  %vm1419_vm1 = vcmp.eq.s32.totalorder %v3299_v23, %v3778_v51 }
  0xd8   : > { %2679 = vmatprep.subr.msk.mxu0 %vm1438_vm2, %v2980_v14  ;;  %2714 = vmatprep.subr.msk.mxu1 %vm1627_vm4, %v2980_v14  ;;  %vm1608_vm2 = vcmp.eq.s32.totalorder %v3299_v23, %v3787_v52  ;;  %vm1434_vm4 = vcmp.eq.s32.totalorder %v3308_v24, %v3778_v51 }
  0xd9   : > { %2680 = vmatpush3.msk.msra.mxu0 %vm1422_vm3, %v2980_v14  ;;  %2715 = vmatpush3.msk.msra.mxu1 %vm1611_vm8, %v2980_v14  ;;  %vm1623_vm3 = vcmp.eq.s32.totalorder %v3308_v24, %v3787_v52  ;;  %vm1418_vm8 = vcmp.eq.s32.totalorder %v3317_v25, %v3778_v51 }
  0xda   : > { %2681 = vmatprep.subr.msk.mxu0 %vm1437_vm15, %v2980_v14  ;;  %2716 = vmatprep.subr.msk.mxu1 %vm1626_vm5, %v2980_v14  ;;  %vm1607_vm15 = vcmp.eq.s32.totalorder %v3317_v25, %v3787_v52  ;;  %vm1433_vm5 = vcmp.eq.s32.totalorder %v3326_v26, %v3778_v51 }
  0xdb   : > { %2682 = vmatpush3.msk.msra.mxu0 %vm1421_vm6, %v2980_v14  ;;  %2717 = vmatpush3.msk.msra.mxu1 %vm1610_vm7, %v2980_v14  ;;  %vm1622_vm6 = vcmp.eq.s32.totalorder %v3326_v26, %v3787_v52  ;;  %vm1417_vm7 = vcmp.eq.s32.totalorder %v3335_v27, %v3778_v51 }
  0xdc   : > { %2683 = vmatprep.subr.msk.mxu0 %vm1436_vm12, %v2980_v14  ;;  %2718 = vmatprep.subr.msk.mxu1 %vm1625_vm10, %v2980_v14  ;;  %vm1606_vm12 = vcmp.eq.s32.totalorder %v3335_v27, %v3787_v52  ;;  %vm1432_vm10 = vcmp.eq.s32.totalorder %v3344_v28, %v3778_v51 }
  0xdd   : > { %2684 = vmatpush3.msk.msra.mxu0 %vm1420_vm11, %v2980_v14  ;;  %2719 = vmatpush3.msk.msra.mxu1 %vm1609_vm9, %v2980_v14  ;;  %vm1621_vm11 = vcmp.eq.s32.totalorder %v3344_v28, %v3787_v52  ;;  %vm1416_vm9 = vcmp.eq.s32.totalorder %v3353_v29, %v3778_v51 }
  0xde   : > { %2685 = vmatprep.subr.msk.mxu0 %vm1435_vm13, %v2980_v14  ;;  %2720 = vmatprep.subr.msk.mxu1 %vm1624_vm0, %v2980_v14  ;;  %vm1605_vm13 = vcmp.eq.s32.totalorder %v3353_v29, %v3787_v52  ;;  %vm1431_vm0 = vcmp.eq.s32.totalorder %v3362_v30, %v3778_v51 }
  0xdf   : > { %2686 = vmatpush3.msk.msra.mxu0 %vm1419_vm1, %v2980_v14  ;;  %2721 = vmatpush3.msk.msra.mxu1 %vm1608_vm2, %v2980_v14  ;;  %vm1620_vm1 = vcmp.eq.s32.totalorder %v3362_v30, %v3787_v52  ;;  %vm1415_vm2 = vcmp.eq.s32.totalorder %v3371_v31, %v3778_v51 }
  0xe0   : > { %2687 = vmatprep.subr.msk.mxu0 %vm1434_vm4, %v2980_v14  ;;  %2722 = vmatprep.subr.msk.mxu1 %vm1623_vm3, %v2980_v14  ;;  %vm1604_vm4 = vcmp.eq.s32.totalorder %v3371_v31, %v3787_v52  ;;  %vm1414_vm3 = vcmp.eq.s32.totalorder %v3389_v33, %v3778_v51 }
  0xe1   : > { %2688 = vmatpush3.msk.msra.mxu0 %vm1418_vm8, %v2980_v14  ;;  %2723 = vmatpush3.msk.msra.mxu1 %vm1607_vm15, %v2980_v14  ;;  %vm1603_vm8 = vcmp.eq.s32.totalorder %v3389_v33, %v3787_v52  ;;  %vm1429_vm15 = vcmp.eq.s32.totalorder %v3398_v34, %v3778_v51 }
  0xe2   : > { %2689 = vmatprep.subr.msk.mxu0 %vm1433_vm5, %v2980_v14  ;;  %2724 = vmatprep.subr.msk.mxu1 %vm1622_vm6, %v2980_v14  ;;  %vm1618_vm5 = vcmp.eq.s32.totalorder %v3398_v34, %v3787_v52  ;;  %vm4284_vm6 = vcmp.eq.s32.totalorder %v3380_v32, %v3778_v51 }
  0xe3   : > { %2690 = vmatpush3.msk.msra.mxu0 %vm1417_vm7, %v2980_v14  ;;  %2725 = vmatpush3.msk.msra.mxu1 %vm1606_vm12, %v2980_v14  ;;  %vm4285_vm7 = vcmp.eq.s32.totalorder %v3380_v32, %v3787_v52  ;;  %vm1428_vm12 = vcmp.eq.s32.totalorder %v3417_v37, %v3778_v51 }
  0xe4   : > { %2691 = vmatprep.subr.msk.mxu0 %vm1432_vm10, %v2980_v14  ;;  %2726 = vmatprep.subr.msk.mxu1 %vm1621_vm11, %v2980_v14  ;;  %vm1617_vm10 = vcmp.eq.s32.totalorder %v3417_v37, %v3787_v52  ;;  %vm1412_vm11 = vcmp.eq.s32.totalorder %v3427_v39, %v3778_v51 }
  0xe5   : > { %2692 = vmatpush3.msk.msra.mxu0 %vm1416_vm9, %v2980_v14  ;;  %2727 = vmatpush3.msk.msra.mxu1 %vm1605_vm13, %v2980_v14  ;;  %vm1601_vm9 = vcmp.eq.s32.totalorder %v3427_v39, %v3787_v52  ;;  %vm4286_vm13 = vcmp.eq.s32.totalorder %v3407_v35, %v3787_v52 }
  0xe6   : > { %2693 = vmatprep.subr.msk.mxu0 %vm1431_vm0, %v2980_v14  ;;  %2728 = vmatprep.subr.msk.mxu1 %vm1620_vm1, %v2980_v14  ;;  %vm1411_vm0 = vcmp.eq.s32.totalorder %v3173_v1, %v3778_v51  ;;  %vm1600_vm1 = vcmp.eq.s32.totalorder %v3173_v1, %v3787_v52 }
  0xe7   : > { %2694 = vmatpush3.msk.msra.mxu0 %vm1415_vm2, %v2980_v14  ;;  %2729 = vmatpush3.msk.msra.mxu1 %vm1604_vm4, %v2980_v14  ;;  %vm4288_vm2 = vcmp.eq.s32.totalorder %v3436_v40, %v3787_v52  ;;  %vm444_vm4 = vcmask 1043456  }
  0xe8   : > { %2695 = vmatprep.subr.msk.mxu0 %vm4284_vm6, %v2980_v14  ;;  %2730 = vmatprep.subr.msk.mxu1 %vm4285_vm7, %v2980_v14 }
  0xe9   : > { %2696 = vmatpush3.msk.msra.mxu0 %vm1414_vm3, %v2980_v14  ;;  %2731 = vmatpush3.msk.msra.mxu1 %vm1603_vm8, %v2980_v14 }
  0xea   : > { %2697 = vmatprep.subr.msk.mxu0 %vm1429_vm15, %v2980_v14  ;;  %2732 = vmatprep.subr.msk.mxu1 %vm1618_vm5, %v2980_v14 }
  0xeb   : > { %2698 = vmatpush3.msk.msra.mxu0 %vm1413_vm14, %v2980_v14  ;;  %2733 = vmatpush3.msk.msra.mxu1 %vm4286_vm13, %v2980_v14  ;;  %vm4287_vm14 = vcmp.eq.s32.totalorder %v3436_v40, %v3778_v51 }
  0xec   : > { %2699 = vmatprep.subr.msk.mxu0 %vm1428_vm12, %v2980_v14  ;;  %2734 = vmatprep.subr.msk.mxu1 %vm1617_vm10, %v2980_v14 }
  0xed   : > { %2700 = vmatpush3.msk.msra.mxu0 %vm1412_vm11, %v2980_v14  ;;  %2735 = vmatpush3.msk.msra.mxu1 %vm1601_vm9, %v2980_v14  ;;  %vm1785_vm11 = vcmask 1040384  }
  0xee   : > { %2701 = vmatprep.subr.msk.mxu0 %vm4287_vm14, %v2980_v14  ;;  %2736 = vmatprep.subr.msk.mxu1 %vm4288_vm2, %v2980_v14  ;;  %vm1789_vm2 = vcmask 1042432  }
  0xef   : > { %2702 = vmatpush3.msk.msra.mxu0 %vm1411_vm0, %v2980_v14  ;;  %1571 = vmatprep.mubr.f32.mxu0 %v3472_v44 }
  0xf0   : > { %2737 = vmatpush3.msk.msra.mxu1 %vm1600_vm1, %v2980_v14  ;;  %1760 = vmatprep.mubr.f32.mxu1 %v3472_v44  ;;  %vm1787_vm1 = vcmask 1041408  }
  0xf1   : > { %1572 = vmatmul.mubr.f32.vlgmr.msra.gmra.mxu0 %v3438_v41  ;;  %1761 = vmatmul.mubr.f32.vlgmr.msra.gmra.mxu1 %v3438_v41 }
 0x14b   : > { %v2493_v53 = vpop.f32.mrf.mxu0  ;;  %v2528_v54 = vpop.f32.mrf.mxu1 }
 0x14d   : > { %v2494_v55 = vpop.f32.mrf.mxu0  ;;  %v2529_v57 = vpop.f32.mrf.mxu1 }
 0x14e   : > { %v2495_v60 = vadd.f32 %v2494_v55, %v2493_v53  ;;  %v2530_v62 = vadd.f32 %v2529_v57, %v2528_v54 }
 0x150   : > { %v442_v1 = vsub.f32 %v4140_v61, %v2495_v60  ;;  %v632_v2 = vsub.f32 %v4140_v61, %v2530_v62 }
 0x152   : > { %v443_v5 = vmul.f32 %v442_v1, %v442_v1  ;;  %v633_v8 = vmul.f32 %v632_v2, %v632_v2 }
 0x154   : > { %v445_v15 = vsel %vm444_vm4, %v443_v5, 0.0  ;;  %v634_v16 = vsel %vm444_vm4, %v633_v8, 0.0 }
 0x155   : > { %v446_v21 = vrot.slane %v445_v15, 4  ;;  %v635_v23 = vrot.slane %v634_v16, 4 }
 0x157   : > { %v447_v28 = vadd.f32 %v446_v21, %v445_v15  ;;  %v636_v29 = vadd.f32 %v635_v23, %v634_v16 }
 0x159   : > { %v448_v34 = vrot.slane %v447_v28, 2  ;;  %v637_v35 = vrot.slane %v636_v29, 2 }
 0x15b   : > { %v449_v40 = vadd.f32 %v448_v34, %v447_v28  ;;  %v638_v41 = vadd.f32 %v637_v35, %v636_v29 }
 0x15d   : > { %v450_v46 = vrot.slane %v449_v40, 1  ;;  %v639_v47 = vrot.slane %v638_v41, 1 }
 0x15f   : > { %v451_v52 = vadd.f32 %v450_v46, %v449_v40  ;;  %v640_v53 = vadd.f32 %v639_v47, %v638_v41 }
 0x16d   : > { %v2563_v56 = vpop.f32.mrf.mxu0  ;;  %v2598_v58 = vpop.f32.mrf.mxu1 }
 0x16f   : > { %v2564_v59 = vpop.f32.mrf.mxu0  ;;  %v2599_v0 = vpop.f32.mrf.mxu1 }
 0x170   : > { %v2565_v63 = vadd.f32 %v2564_v59, %v2563_v56  ;;  %v2600_v3 = vadd.f32 %v2599_v0, %v2598_v58  ;;  %v452_v58 = vmul.f32 0.25, %v451_v52  ;;  %v641_v59 = vmul.f32 0.25, %v640_v53 }
 0x172   : > { %v821_v4 = vsub.f32 %v4140_v61, %v2565_v63  ;;  %v1010_v9 = vsub.f32 %v4140_v61, %v2600_v3  ;;  %v4154_v3 = vadd.f32 1e-09, %v452_v58 }
 0x174   : > { %v822_v10 = vmul.f32 %v821_v4, %v821_v4  ;;  %v1011_v17 = vmul.f32 %v1010_v9, %v1010_v9  ;;  %v4156_v4 = vadd.f32 1e-09, %v641_v59  ;;  %2805 = vrsqrt.f32 %v4154_v3 }
 0x175   : > { %vm456_vm3 = vcmp.eq.f32.partialorder %v4154_v3, inf  ;;  %v459_v47 = vand.u32 2147483648, %v4154_v3  ;;  %vm458_vm5 = vcmp.eq.f32.partialorder %v4154_v3, 0.0 }
 0x176   : > { %v823_v20 = vsel %vm444_vm4, %v822_v10, 0.0  ;;  %v1012_v25 = vsel %vm444_vm4, %v1011_v17, 0.0  ;;  %2807 = vrsqrt.f32 %v4156_v4  ;;  %vm645_vm8 = vcmp.eq.f32.partialorder %v4156_v4, inf }
 0x177   : > { %v824_v24 = vrot.slane %v823_v20, 4  ;;  %v1013_v30 = vrot.slane %v1012_v25, 4  ;;  %vm647_vm6 = vcmp.eq.f32.partialorder %v4156_v4, 0.0 }
 0x179   : > { %v825_v31 = vadd.f32 %v824_v24, %v823_v20  ;;  %v1014_v36 = vadd.f32 %v1013_v30, %v1012_v25 }
 0x17b   : > { %v826_v38 = vrot.slane %v825_v31, 2  ;;  %v1015_v42 = vrot.slane %v1014_v36, 2 }
 0x17d   : > { %v827_v44 = vadd.f32 %v826_v38, %v825_v31  ;;  %v1016_v48 = vadd.f32 %v1015_v42, %v1014_v36 }
 0x17f   : > { %v828_v50 = vrot.slane %v827_v44, 1  ;;  %v1017_v54 = vrot.slane %v1016_v48, 1 }
 0x181   : > { %v829_v56 = vadd.f32 %v828_v50, %v827_v44  ;;  %v1018_v60 = vadd.f32 %v1017_v54, %v1016_v48  ;;  %v2806_v30 = vpop.eup %2805 }
 0x183   : > { %v830_v63 = vmul.f32 0.25, %v829_v56  ;;  %v1019_v5 = vmul.f32 0.25, %v1018_v60 }
 0x185   : > { %v4158_v9 = vadd.f32 1e-09, %v830_v63  ;;  %v4164_v15 = vadd.f32 1e-09, %v1019_v5 }
 0x187   : > { %2809 = vrsqrt.f32 %v4158_v9  ;;  %vm834_vm15 = vcmp.eq.f32.partialorder %v4158_v9, inf  ;;  %v837_v54 = vand.u32 2147483648, %v4158_v9  ;;  %vm836_vm7 = vcmp.eq.f32.partialorder %v4158_v9, 0.0 }
 0x188   : > { %2811 = vrsqrt.f32 %v4164_v15  ;;  %vm1023_vm12 = vcmp.eq.f32.partialorder %v4164_v15, inf  ;;  %v1026_v60 = vand.u32 2147483648, %v4164_v15  ;;  %vm1025_vm9 = vcmp.eq.f32.partialorder %v4164_v15, 0.0 }
 0x18f   : > { %v2633_v6 = vpop.f32.mrf.mxu0  ;;  %v2668_v7 = vpop.f32.mrf.mxu1 }
 0x191   : > { %v2634_v11 = vpop.f32.mrf.mxu0  ;;  %v2669_v12 = vpop.f32.mrf.mxu1 }
 0x192   : > { %v2635_v13 = vadd.f32 %v2634_v11, %v2633_v6  ;;  %v2670_v14 = vadd.f32 %v2669_v12, %v2668_v7 }
 0x194   : > { %v1199_v18 = vsub.f32 %v4140_v61, %v2635_v13  ;;  %v1388_v19 = vsub.f32 %v4140_v61, %v2670_v14 }
 0x196   : > { %v1200_v22 = vmul.f32 %v1199_v18, %v1199_v18  ;;  %v1389_v26 = vmul.f32 %v1388_v19, %v1388_v19 }
 0x198   : > { %v1201_v27 = vsel %vm444_vm4, %v1200_v22, 0.0  ;;  %v1390_v33 = vsel %vm444_vm4, %v1389_v26, 0.0 }
 0x199   : > { %v1202_v32 = vrot.slane %v1201_v27, 4  ;;  %v1391_v37 = vrot.slane %v1390_v33, 4 }
 0x19b   : > { %v1203_v39 = vadd.f32 %v1202_v32, %v1201_v27  ;;  %v1392_v43 = vadd.f32 %v1391_v37, %v1390_v33  ;;  %v2808_v33 = vpop.eup %2807  ;;  %v455_v37 = vmul.f32 %v2806_v30, %v4154_v3 }
 0x19c   : > { %v2810_v34 = vpop.eup %2809  ;;  %v644_v38 = vmul.f32 %v2808_v33, %v4156_v4 }
 0x19d   : > { %v1204_v45 = vrot.slane %v1203_v39, 2  ;;  %v1393_v49 = vrot.slane %v1392_v43, 2  ;;  %v2812_v41 = vpop.eup %2811  ;;  %v833_v42 = vmul.f32 %v2810_v34, %v4158_v9  ;;  %v457_v46 = vsel %vm456_vm3, %v4154_v3, %v455_v37 }
 0x19e   : > { %v646_v48 = vsel %vm645_vm8, %v4156_v4, %v644_v38  ;;  %vm1792_vm3 = vcmask 1044480  }
 0x19f   : > { %v1205_v51 = vadd.f32 %v1204_v45, %v1203_v39  ;;  %v1394_v55 = vadd.f32 %v1393_v49, %v1392_v43  ;;  %v1022_v49 = vmul.f32 %v2812_v41, %v4164_v15  ;;  %v835_v52 = vsel %vm834_vm15, %v4158_v9, %v833_v42 }
 0x1a1   : > { %v1206_v57 = vrot.slane %v1205_v51, 1  ;;  %v1395_v62 = vrot.slane %v1394_v55, 1  ;;  %v1024_v58 = vsel %vm1023_vm12, %v4164_v15, %v1022_v49 }
 0x1a2   : > { %v1027_v3 = vsel %vm1025_vm9, %v1026_v60, %v1024_v58 }
 0x1a3   : > { %v1207_v0 = vadd.f32 %v1206_v57, %v1205_v51  ;;  %v1396_v6 = vadd.f32 %v1395_v62, %v1394_v55  ;;  %v648_v51 = vand.u32 2147483648, %v4156_v4  ;;  %v460_v55 = vsel %vm458_vm5, %v459_v47, %v457_v46 }
 0x1a4   : > { %v838_v57 = vsel %vm836_vm7, %v837_v54, %v835_v52  ;;  %v461_v63 = vsub.f32 0.0, %v460_v55  ;;  %vm1796_vm7 = vcmask 1046528  }
 0x1a5   : > { %v1208_v10 = vmul.f32 0.25, %v1207_v0  ;;  %v1397_v16 = vmul.f32 0.25, %v1396_v6  ;;  %v649_v56 = vsel %vm647_vm6, %v648_v51, %v646_v48  ;;  %vm1794_vm6 = vcmask 1045504  }
 0x1a6   : > { %v650_v0 = vsub.f32 0.0, %v649_v56 }
 0x1a7   : > { %v4167_v17 = vadd.f32 1e-09, %v1208_v10  ;;  %v4172_v22 = vadd.f32 1e-09, %v1397_v16 }
 0x1a9   : > { %2813 = vrsqrt.f32 %v4167_v17  ;;  %vm1212_vm10 = vcmp.eq.f32.partialorder %v4167_v17, inf  ;;  %vm1214_vm13 = vcmp.eq.f32.partialorder %v4167_v17, 0.0  ;;  %vm1401_vm0 = vcmp.eq.f32.partialorder %v4172_v22, inf }
 0x1aa   : > { %2815 = vrsqrt.f32 %v4172_v22  ;;  %v1404_v6 = vand.u32 2147483648, %v4172_v22  ;;  %vm1403_vm14 = vcmp.eq.f32.partialorder %v4172_v22, 0.0 }
 0x1b1   : > { %v2703_v1 = vpop.f32.mrf.mxu0  ;;  %v2738_v2 = vpop.f32.mrf.mxu1 }
 0x1b3   : > { %v2704_v7 = vpop.f32.mrf.mxu0  ;;  %v2739_v8 = vpop.f32.mrf.mxu1 }
 0x1b4   : > { %v2705_v11 = vadd.f32 %v2704_v7, %v2703_v1  ;;  %v2740_v12 = vadd.f32 %v2739_v8, %v2738_v2  ;;  %v1215_v1 = vand.u32 2147483648, %v4167_v17  ;;  %v839_v2 = vsub.f32 0.0, %v838_v57 }
 0x1b5   : > { %v1786_v7 = vsel %vm1785_vm11, %v461_v63, %v650_v0  ;;  %v1028_v8 = vsub.f32 0.0, %v1027_v3 }
 0x1b6   : > { %v1577_v13 = vsub.f32 %v4140_v61, %v2705_v11  ;;  %v1766_v14 = vsub.f32 %v4140_v61, %v2740_v12  ;;  %v2814_v43 = vpop.eup %2813  ;;  %v1788_v9 = vsel %vm1787_vm1, %v1786_v7, %v839_v2 }
 0x1b7   : > { %v2816_v50 = vpop.eup %2815  ;;  %v1211_v53 = vmul.f32 %v2814_v43, %v4167_v17 }
 0x1b8   : > { %v1578_v18 = vmul.f32 %v1577_v13, %v1577_v13  ;;  %v1767_v19 = vmul.f32 %v1766_v14, %v1766_v14  ;;  %v1400_v59 = vmul.f32 %v2816_v50, %v4172_v22  ;;  %v1790_v14 = vsel %vm1789_vm2, %v1788_v9, %v1028_v8 }
 0x1b9   : > { %v1213_v62 = vsel %vm1212_vm10, %v4167_v17, %v1211_v53 }
 0x1ba   : > { %v1579_v20 = vsel %vm444_vm4, %v1578_v18, 0.0  ;;  %v1768_v21 = vsel %vm444_vm4, %v1767_v19, 0.0  ;;  %v1216_v4 = vsel %vm1214_vm13, %v1215_v1, %v1213_v62  ;;  %v1402_v5 = vsel %vm1401_vm0, %v4172_v22, %v1400_v59 }
 0x1bb   : > { %v1580_v61 = vrot.slane %v1579_v20, 4  ;;  %v1769_v23 = vrot.slane %v1768_v21, 4  ;;  %v1217_v10 = vsub.f32 0.0, %v1216_v4  ;;  %v1405_v11 = vsel %vm1403_vm14, %v1404_v6, %v1402_v5 }
 0x1bc   : > { %v1406_v15 = vsub.f32 0.0, %v1405_v11 }
 0x1bd   : > { %v1581_v24 = vadd.f32 %v1580_v61, %v1579_v20  ;;  %v1770_v25 = vadd.f32 %v1769_v23, %v1768_v21  ;;  %v1791_v17 = vsel %vm444_vm4, %v1790_v14, %v1217_v10 }
 0x1bf   : > { %v1582_v26 = vrot.slane %v1581_v24, 2  ;;  %v1771_v27 = vrot.slane %v1770_v25, 2 }
 0x1c1   : > { %v1583_v28 = vadd.f32 %v1582_v26, %v1581_v24  ;;  %v1772_v29 = vadd.f32 %v1771_v27, %v1770_v25  ;;  %v1793_v25 = vsel %vm1792_vm3, %v1791_v17, %v1406_v15 }
 0x1c3   : > { %v1584_v31 = vrot.slane %v1583_v28, 1  ;;  %v1773_v32 = vrot.slane %v1772_v29, 1 }
 0x1c5   : > { %v1585_v35 = vadd.f32 %v1584_v31, %v1583_v28  ;;  %v1774_v36 = vadd.f32 %v1773_v32, %v1772_v29 }
 0x1c7   : > { %v1586_v39 = vmul.f32 0.25, %v1585_v35  ;;  %v1775_v40 = vmul.f32 0.25, %v1774_v36 }
 0x1c9   : > { %v4180_v44 = vadd.f32 1e-09, %v1586_v39  ;;  %v4182_v45 = vadd.f32 1e-09, %v1775_v40 }
 0x1cb   : > { %2817 = vrsqrt.f32 %v4180_v44  ;;  %vm1590_vm8 = vcmp.eq.f32.partialorder %v4180_v44, inf  ;;  %v1593_v18 = vand.u32 2147483648, %v4180_v44  ;;  %vm1592_vm15 = vcmp.eq.f32.partialorder %v4180_v44, 0.0 }
 0x1cc   : > { %2819 = vrsqrt.f32 %v4182_v45  ;;  %vm1779_vm5 = vcmp.eq.f32.partialorder %v4182_v45, inf  ;;  %v1782_v21 = vand.u32 2147483648, %v4182_v45  ;;  %vm1781_vm4 = vcmp.eq.f32.partialorder %v4182_v45, 0.0 }
 0x1d8   : > { %v2818_v12 = vpop.eup %2817 }
 0x1d9   : > { %v2820_v13 = vpop.eup %2819  ;;  %v1589_v16 = vmul.f32 %v2818_v12, %v4180_v44 }
 0x1da   : > { %v1778_v19 = vmul.f32 %v2820_v13, %v4182_v45 }
 0x1db   : > { %v1591_v20 = vsel %vm1590_vm8, %v4180_v44, %v1589_v16 }
 0x1dc   : > { %v1594_v22 = vsel %vm1592_vm15, %v1593_v18, %v1591_v20  ;;  %v1780_v61 = vsel %vm1779_vm5, %v4182_v45, %v1778_v19 }
 0x1dd   : > { %v1595_v23 = vsub.f32 0.0, %v1594_v22  ;;  %v1783_v24 = vsel %vm1781_vm4, %v1782_v21, %v1780_v61 }
 0x1de   : > { %v1784_v26 = vsub.f32 0.0, %v1783_v24 }
 0x1df   : > { %v1795_v27 = vsel %vm1794_vm6, %v1793_v25, %v1595_v23 }
 0x1e0   : > { %v1797_v28 = vsel %vm1796_vm7, %v1795_v27, %v1784_v26 }
 0x1e1   : > { %v1798_v29 = vrot.slane %v1797_v28, 4 }
 0x1e3   : > { %v1799_v30 = vmax.f32 %v1797_v28, %v1798_v29 }
 0x1e5   : > { %v1800_v31 = vrot.slane %v1799_v30, 2 }
 0x1e7   : > { %v1801_v32 = vmax.f32 %v1799_v30, %v1800_v31 }
 0x1e9   : > { %v1802_v33 = vrot.slane %v1801_v32, 1 }
 0x1eb   : > { %v1803_v34 = vmax.f32 %v1801_v32, %v1802_v33 }
 0x1ed   : > { %v1804_v35 = vsub.f32 %v1797_v28, %v1803_v34 }
 0x1ef   : > { %v1805_v36 = vmul.f32 1.442695, %v1804_v35 }
 0x1f1   : > { %2821 = vpow2.f32 %v1805_v36 }
 0x1fe   : > { %v2822_v37 = vpop.eup %2821 }
 0x1ff   : > { %v1807_v38 = vrot.slane %v2822_v37, 4 }
 0x201   : > { %v1808_v39 = vadd.f32 %v2822_v37, %v1807_v38 }
 0x203   : > { %v1809_v40 = vrot.slane %v1808_v39, 2 }
 0x205   : > { %v1810_v41 = vadd.f32 %v1809_v40, %v1808_v39 }
 0x207   : > { %v1811_v42 = vrot.slane %v1810_v41, 1 }
 0x209   : > { %v1812_v43 = vadd.f32 %v1811_v42, %v1810_v41 }
 0x20b   : > { %2823 = vrcp.f32 %v1812_v43 }
 0x218   : > { %v2824_v44 = vpop.eup %2823 }
 0x219   : > { %v1814_v45 = vmul.f32 %v2824_v44, %v2822_v37 }
 0x21b   : > { %1815 = vst [vmem:[%s232_s22] sm:$0xff] %v1814_v45 }
 0x21c   : > { %2920 = shalt.err (!%p2917_p13)
}
 0x21d   : > { %s2921_s18 = scalar_lea.hbm %s1828_s6, 128  ;;  %s2925_s10 = scalar_lea.hbm %s4264_s3, 256 }
 0x21e   : > { %p2922_p7 = scmp.ne.s32.totalorder %s1828_s6, %s2921_s18  ;;  %p2926_p5 = scmp.lt.s32.totalorder %s1828_s6, %s4264_s3 }
 0x21f   : > { %p2927_p9 = scmp.lt.s32.totalorder %s2925_s10, %s2921_s18 }
 0x220   : > { %p2923_p0 = pnand %p2922_p7, %p4289_p8 }
 0x221   : > { %p2928_p10 = por %p2927_p9, %p2926_p5 }
 0x222   : > { %p2924_p6 = pneg %p2923_p0 }
 0x224   : > { %p2929_p11 = pnand %p2928_p10, %p2924_p6 }
 0x226   : > { %2932 = shalt.err (!%p2929_p11)
}
 0x227   : > { %2749 = dma.vmem_to_hbm [thread:$0]  (%p4289_p8), %s1831_s27, 128, %s1828_s6, %s1817_s7  }
 0x228 PF: > { %s1842_s26 = sand.u32 1, %s2963_s12   ;;  %p4290_p3 = scmp.ne.s32.totalorder %s4275_s25, 0 }
 0x229   : > { %p4291_p2 = scmp.ge.s32.totalorder %s2975_s15, 2  ;;  %s1843_s28 = scalar_lea.sflag [#allocation4], %s1842_s26 }
 0x22b   : > { %p2763_p4 = pnand %p4291_p2, %p4290_p3 }
 0x22d   : > { %p2764_p12 = pneg %p2763_p4 }
 0x22f   : > { %2958 = dma.done.wait (%p2764_p12), %s1843_s28, 128  }
 0x230   : > { %2960 = vsyncadd (%p2764_p12), %s1843_s28, 4294967168  ;;  %p17_p1 = scmp.ge.s32.totalorder %s3023_s16, 4   ;;  %s4292_s12 = smov %s2967_s13 }
 0x231   : > { %s4293_s13 = smov %s2971_s14  ;;  %s4294_s14 = smov %s3034_s19 }
 0x232   : > { %s4295_s15 = smov %s3023_s16  ;;  %19 = sbr.rel (!%p17_p1) target bundleno = 6 (0x6), region = 93 }
 0x237   :  { %1848 = vsyncpa [#allocation3], 1 }
 0x238   :  { %1850 = vsyncpa [#allocation3 + $0x1], 1 }
 0x239   :  { %1851 = vsyncpa [#allocation6], 1 }
 0x23a   :  { %1853 = vsyncpa [#allocation6 + $0x1], 1 }
 0x23b   :  { %1854 = vsyncpa [#allocation4], 1 }
 0x23c   :  { %1856 = vsyncpa [#allocation4 + $0x1], 1 }

</bundles_post_ra>
